<compile_context>
chip_gen: v5e
topology: v5e:2x2
jax: 0.10.0
libtpu: 0.0.40
codegen_flags: <defaults>
</compile_context>

<pallas_src>
import functools
import math

import jax
import jax.numpy as jnp
from jax import lax
from jax.experimental import pallas as pl
from jax.experimental.pallas import tpu as pltpu

LANE = 128        # channel / K padding granularity (lane width)
TM_MM = 512       # M tile for the plain matmul kernel
TM_EW = 256       # M tile for elementwise kernels (v5e 16 MiB scoped-VMEM safe)
TN_MAX = 512      # max Cout tile for the fused conv kernel
TARGET_ROWS = 256 # target output rows per fused-conv grid step
BN_EPS = 1e-5


# ------------------------------- helpers ----------------------------------- #

def _round_up(x, m):
    return (x + m - 1) // m * m


def _pad2(x, rows, cols):
    r, c = x.shape
    return jnp.pad(x, ((0, rows - r), (0, cols - c)))


def _ew_tile(m):
    t = max(8, min(TM_EW, m))
    while m % t:
        t -= 8
    return t


def _pick_th(h, w, target_rows=TARGET_ROWS):
    f = 8 // math.gcd(w, 8)                 # th multiple of f  =>  th*w % 8 == 0
    th = f * max(1, target_rows // (w * f))
    th = min(th, _round_up(h, f))
    return max(th, f)


# ----------------------------- Pallas kernels ------------------------------ #

def _tapconv_kernel(x_ref, w_ref, y_ref, psum_ref, psq_ref, *, th, wo):
    """Fused 3x3 stride-1 conv tile: 9 shifted bf16 matmuls, f32 accumulation,
    bf16 store, plus per-channel sum / sum-of-squares partials (BN epilogue)."""
    cinp = w_ref.shape[1]
    tn = y_ref.shape[-1]
    xt = x_ref[0]                                        # (th+2, wo+2, Cinp) bf16
    acc = jnp.zeros((th * wo, tn), jnp.float32)
    for t in range(9):                                   # static unroll over taps
        dy, dx = divmod(t, 3)
        a = xt[dy:dy + th, dx:dx + wo, :]                # (th, wo, Cinp)
        a2 = a.reshape(th * wo, cinp)
        acc = acc + jnp.dot(a2, w_ref[t], preferred_element_type=jnp.float32)
    y_ref[...] = acc.astype(y_ref.dtype)
    psum_ref[...] = jnp.broadcast_to(
        jnp.sum(acc, axis=0, keepdims=True), psum_ref.shape)
    psq_ref[...] = jnp.broadcast_to(
        jnp.sum(acc * acc, axis=0, keepdims=True), psq_ref.shape)


def _mm_stats_kernel(a_ref, w_ref, y_ref, psum_ref, psq_ref):
    """(tm, Kp) @ (Kp, Cp) single-shot matmul (resident weight, no K grid axis)
    with fused BN-statistic partials."""
    y = jnp.dot(a_ref[...], w_ref[...], preferred_element_type=jnp.float32)
    y_ref[...] = y.astype(y_ref.dtype)
    psum_ref[...] = jnp.broadcast_to(
        jnp.sum(y, axis=0, keepdims=True), psum_ref.shape)
    psq_ref[...] = jnp.broadcast_to(
        jnp.sum(y * y, axis=0, keepdims=True), psq_ref.shape)


def _bn_relu_kernel(y_ref, sc_ref, sh_ref, o_ref):
    y = y_ref[...].astype(jnp.float32)
    o_ref[...] = jnp.maximum(y * sc_ref[...] + sh_ref[...], 0.0).astype(o_ref.dtype)


def _bn_add_bn_relu_kernel(y2_ref, ys_ref, sc2_ref, sh2_ref, scs_ref, shs_ref, o_ref):
    main = y2_ref[...].astype(jnp.float32) * sc2_ref[...] + sh2_ref[...]
    short = ys_ref[...].astype(jnp.float32) * scs_ref[...] + shs_ref[...]
    o_ref[...] = jnp.maximum(main + short, 0.0)


# --------------------------- pallas_call wrappers --------------------------- #

def tapconv3x3_stats(x_nhwc, w_oihw):
    """3x3 / stride-1 / pad-1 conv fused with batch-statistic sums.

    x_nhwc: (N, H, W, Cx) bf16; channels beyond w_oihw.shape[1] must be zero.
    Returns y of shape (N*Hb*th*W, Coutp) bf16 (rows beyond H per image are zero),
    plus f32 per-channel sum / sum-of-squares (zero-pad rows contribute 0 -- no bias).
    """
    N, H, W, cx = x_nhwc.shape
    cout, cin_w = w_oihw.shape[0], w_oihw.shape[1]
    cinp = _round_up(cx, LANE)
    coutp = _round_up(cout, LANE)
    th = _pick_th(H, W)
    hb = -(-H // th)
    nb = N * hb
    rows_blk = th * W

    # halo'd row blocks: ~(th+2)/th duplication instead of a 9x im2col blow-up
    xp = jnp.pad(x_nhwc, ((0, 0), (1, 1 + hb * th - H), (1, 1), (0, cinp - cx)))
    row_idx = jnp.arange(hb)[:, None] * th + jnp.arange(th + 2)[None, :]
    xb = xp[:, row_idx].reshape(nb, th + 2, W + 2, cinp)

    w = jnp.transpose(w_oihw, (2, 3, 1, 0))                       # (3,3,Cin,Cout)
    w = jnp.pad(w, ((0, 0), (0, 0), (0, cinp - cin_w), (0, coutp - cout)))
    w = w.reshape(9, cinp, coutp).astype(jnp.bfloat16)

    tn = min(TN_MAX, coutp)
    while coutp % tn:
        tn -= LANE
    ntiles = coutp // tn

    kernel = functools.partial(_tapconv_kernel, th=th, wo=W)
    y, psum, psq = pl.pallas_call(
        kernel,
        out_shape=(
            jax.ShapeDtypeStruct((nb * rows_blk, coutp), jnp.bfloat16),
            jax.ShapeDtypeStruct((8 * nb, coutp), jnp.float32),
            jax.ShapeDtypeStruct((8 * nb, coutp), jnp.float32),
        ),
        grid=(ntiles, nb),     # cout tiles outer -> weight block stays resident
        in_specs=[
            pl.BlockSpec((1, th + 2, W + 2, cinp), lambda j, i: (i, 0, 0, 0)),
            pl.BlockSpec((9, cinp, tn), lambda j, i: (0, 0, j)),
        ],
        out_specs=(
            pl.BlockSpec((rows_blk, tn), lambda j, i: (i, j)),
            pl.BlockSpec((8, tn), lambda j, i: (i, j)),
            pl.BlockSpec((8, tn), lambda j, i: (i, j)),
        ),
        compiler_params=pltpu.CompilerParams(
            dimension_semantics=("parallel", "parallel")),
    )(xb, w)

    ch_sum = psum.reshape(nb, 8, coutp)[:, 0].sum(axis=0)
    ch_sq = psq.reshape(nb, 8, coutp)[:, 0].sum(axis=0)
    return y, ch_sum, ch_sq


def matmul_stats(a, w_mat):
    """Matmul (1x1 shortcut conv / strided-conv im2col fallback) fused with BN stats.
    a: (M, K) bf16, w_mat: (K, C) f32.  Returns y (Mp, Cp) bf16 + channel sums (f32)."""
    M, K = a.shape
    C = w_mat.shape[1]
    Kp = _round_up(K, LANE)
    Cp = _round_up(C, LANE)
    tm = min(TM_MM, _round_up(M, 8))
    Mp = _round_up(M, tm)
    mtiles = Mp // tm

    a_p = _pad2(a.astype(jnp.bfloat16), Mp, Kp)
    w_p = _pad2(w_mat, Kp, Cp).astype(jnp.bfloat16)

    y, psum, psq = pl.pallas_call(
        _mm_stats_kernel,
        out_shape=(
            jax.ShapeDtypeStruct((Mp, Cp), jnp.bfloat16),
            jax.ShapeDtypeStruct((8 * mtiles, Cp), jnp.float32),
            jax.ShapeDtypeStruct((8 * mtiles, Cp), jnp.float32),
        ),
        grid=(mtiles,),
        in_specs=[
            pl.BlockSpec((tm, Kp), lambda i: (i, 0)),
            pl.BlockSpec((Kp, Cp), lambda i: (0, 0)),   # resident weight
        ],
        out_specs=(
            pl.BlockSpec((tm, Cp), lambda i: (i, 0)),
            pl.BlockSpec((8, Cp), lambda i: (i, 0)),
            pl.BlockSpec((8, Cp), lambda i: (i, 0)),
        ),
        compiler_params=pltpu.CompilerParams(dimension_semantics=("parallel",)),
    )(a_p, w_p)

    ch_sum = psum.reshape(mtiles, 8, Cp)[:, 0].sum(axis=0)
    ch_sq = psq.reshape(mtiles, 8, Cp)[:, 0].sum(axis=0)
    return y, ch_sum, ch_sq


def bn_relu(y, scale, shift):
    M2, Cp = y.shape
    tm = _ew_tile(M2)
    return pl.pallas_call(
        _bn_relu_kernel,
        out_shape=jax.ShapeDtypeStruct((M2, Cp), jnp.bfloat16),
        grid=(M2 // tm,),
        in_specs=[
            pl.BlockSpec((tm, Cp), lambda i: (i, 0)),
            pl.BlockSpec((1, Cp), lambda i: (0, 0)),
            pl.BlockSpec((1, Cp), lambda i: (0, 0)),
        ],
        out_specs=pl.BlockSpec((tm, Cp), lambda i: (i, 0)),
        compiler_params=pltpu.CompilerParams(dimension_semantics=("parallel",)),
    )(y, scale, shift)


def bn_add_bn_relu(y2, ys, sc2, sh2, scs, shs):
    Mf, Cp = y2.shape
    tm = _ew_tile(Mf)
    big = pl.BlockSpec((tm, Cp), lambda i: (i, 0))
    small = pl.BlockSpec((1, Cp), lambda i: (0, 0))
    return pl.pallas_call(
        _bn_add_bn_relu_kernel,
        out_shape=jax.ShapeDtypeStruct((Mf, Cp), jnp.float32),
        grid=(Mf // tm,),
        in_specs=[big, big, small, small, small, small],
        out_specs=big,
        compiler_params=pltpu.CompilerParams(dimension_semantics=("parallel",)),
    )(y2, ys, sc2, sh2, scs, shs)


# ------------------------------- JAX glue ----------------------------------- #

def bn_scale_shift(ch_sum, ch_sq, count, gamma, beta, cp, eps=BN_EPS):
    """Fold batch-stat BN into a per-channel affine y*scale + shift.  Conv bias is
    omitted from the matmuls: it shifts the batch mean identically and cancels."""
    gamma_p = jnp.pad(gamma.astype(jnp.float32), (0, cp - gamma.shape[0]),
                      constant_values=1.0)
    beta_p = jnp.pad(beta.astype(jnp.float32), (0, cp - beta.shape[0]))
    mean = ch_sum / count
    var = jnp.maximum(ch_sq / count - mean * mean, 0.0)   # biased var (PyTorch BN)
    scale = gamma_p / jnp.sqrt(var + eps)
    shift = beta_p - mean * scale
    return scale.reshape(1, cp), shift.reshape(1, cp)


def im2col(x_padded, ksize, stride):
    """x already spatially padded (NHWC).  Returns ((M, k*k*C), (Ho, Wo))."""
    N, Hp, Wp, C = x_padded.shape
    Ho = (Hp - ksize) // stride + 1
    Wo = (Wp - ksize) // stride + 1
    cols = []
    for dy in range(ksize):
        for dx in range(ksize):
            cols.append(x_padded[:, dy:dy + stride * Ho:stride,
                                 dx:dx + stride * Wo:stride, :])
    patches = jnp.concatenate(cols, axis=-1)
    return patches.reshape(N * Ho * Wo, ksize * ksize * C), (Ho, Wo)


def conv_weight_to_mat(w_oihw):
    """PyTorch (Cout, Cin, kh, kw) -> (kh*kw*Cin, Cout), matching im2col order."""
    cout, cin, kh, kw = w_oihw.shape
    return jnp.transpose(w_oihw, (2, 3, 1, 0)).reshape(kh * kw * cin, cout)


def residual_block_forward(x_nchw, params, stride):
    p = params
    x = jnp.transpose(x_nchw, (0, 2, 3, 1)).astype(jnp.bfloat16)   # NHWC bf16 working copy
    N, H, W, cin = x.shape
    cout = p["w1"].shape[0]
    cp = _round_up(cout, LANE)

    # ---- conv1 (3x3, stride) with fused batch statistics -----------------------
    if stride == 1:
        y1, s1, q1 = tapconv3x3_stats(x, p["w1"])
        ho, wo = H, W
    else:
        a1, (ho, wo) = im2col(jnp.pad(x, ((0, 0), (1, 1), (1, 1), (0, 0))), 3, stride)
        y1, s1, q1 = matmul_stats(a1, conv_weight_to_mat(p["w1"]))
    m = N * ho * wo
    sc1, sh1 = bn_scale_shift(s1, q1, m, p["g1"], p["be1"], cp)
    o1 = bn_relu(y1, sc1, sh1)                                     # bf16, channels padded
    if stride == 1:
        o1 = o1.reshape(N, -1, wo, cp)[:, :ho]                     # drop per-image pad rows
    else:
        o1 = o1[:m].reshape(N, ho, wo, cp)

    # ---- conv2 (3x3, stride 1): fused halo-block conv + batch statistics -------
    y2, s2, q2 = tapconv3x3_stats(o1, p["w2"])
    sc2, sh2 = bn_scale_shift(s2, q2, m, p["g2"], p["be2"], cp)
    y2 = y2.reshape(N, -1, wo, cp)[:, :ho].reshape(m, cp)

    # ---- shortcut ---------------------------------------------------------------
    if stride != 1 or cin != cout:
        xs = x[:, ::stride, ::stride, :].reshape(-1, cin)
        ys, ss, qs = matmul_stats(xs, conv_weight_to_mat(p["ws"]))
        scs, shs = bn_scale_shift(ss, qs, m, p["gs"], p["bes"], cp)
        ys = ys[:m]
    else:
        ys = jnp.pad(x, ((0, 0), (0, 0), (0, 0), (0, cp - cin))).reshape(m, cp)
        scs = jnp.ones((1, cp), jnp.float32)
        shs = jnp.zeros((1, cp), jnp.float32)

    # ---- fused: BN2(main) + BN_s(shortcut) -> add -> ReLU (one elementwise pass)
    mf = _round_up(m, 8)
    out = bn_add_bn_relu(_pad2(y2, mf, cp), _pad2(ys, mf, cp), sc2, sh2, scs, shs)
    out = out[:m, :cout].reshape(N, ho, wo, cout)
    return jnp.transpose(out, (0, 3, 1, 2))                        # back to NCHW


# ------------------------- pure-JAX references (check) ---------------------- #

def _ref_forward(x_nchw, p, stride, mxu_dtype, match_bf16=False):
    """Reference ResidualBlock forward.  match_bf16=True additionally rounds
    intermediate activations to bf16 to mirror the kernel's storage precision."""
    q = (lambda t: t.astype(jnp.bfloat16).astype(jnp.float32)) if match_bf16 \
        else (lambda t: t)
    x = q(jnp.transpose(x_nchw, (0, 2, 3, 1)).astype(jnp.float32))

    def conv(inp, w_oihw, b, s, pad):
        w = jnp.transpose(w_oihw, (2, 3, 1, 0))  # HWIO
        y = lax.conv_general_dilated(
            inp.astype(mxu_dtype), w.astype(mxu_dtype), (s, s),
            [(pad, pad), (pad, pad)],
            dimension_numbers=("NHWC", "HWIO", "NHWC"),
            preferred_element_type=jnp.float32,
            precision=lax.Precision.HIGHEST)
        return y + b

    def bn(y, g, be, eps=BN_EPS):
        mean = y.mean(axis=(0, 1, 2))
        var = y.var(axis=(0, 1, 2))
        return (y - mean) / jnp.sqrt(var + eps) * g + be

    y1 = q(conv(x, p["w1"], p["b1"], stride, 1))
    o1 = q(jax.nn.relu(bn(y1, p["g1"], p["be1"])))
    y2 = q(conv(o1, p["w2"], p["b2"], 1, 1))
    main = bn(y2, p["g2"], p["be2"])
    cin, cout = p["w1"].shape[1], p["w1"].shape[0]
    if stride != 1 or cin != cout:
        ysc = q(conv(x, p["ws"], p["bs"], stride, 0))
        sc = bn(ysc, p["gs"], p["bes"])
    else:
        sc = x
    out = jax.nn.relu(main + sc)
    return jnp.transpose(out, (0, 3, 1, 2))


# ----------------------------------- main ------------------------------------ #

def _make_params(key, cin, cout, proj):
    ks = jax.random.split(key, 6)
    p = {
        "w1": jax.random.normal(ks[0], (cout, cin, 3, 3), jnp.float32) * 0.1,
        "b1": jax.random.normal(ks[1], (cout,), jnp.float32) * 0.05,
        "w2": jax.random.normal(ks[2], (cout, cout, 3, 3), jnp.float32) * 0.1,
        "b2": jax.random.normal(ks[3], (cout,), jnp.float32) * 0.05,
        "g1": jnp.ones((cout,), jnp.float32), "be1": jnp.zeros((cout,), jnp.float32),
        "g2": jnp.ones((cout,), jnp.float32), "be2": jnp.zeros((cout,), jnp.float32),
    }
    if proj:
        p["ws"] = jax.random.normal(ks[4], (cout, cin, 1, 1), jnp.float32) * 0.1
        p["bs"] = jax.random.normal(ks[5], (cout,), jnp.float32) * 0.05
        p["gs"] = jnp.ones((cout,), jnp.float32)
        p["bes"] = jnp.zeros((cout,), jnp.float32)
    return p


if __name__ == "__main__":
    fwd = jax.jit(residual_block_forward, static_argnames=("stride",))
    key = jax.random.PRNGKey(0)
    cases = [
        dict(cin=4, cout=8, stride=2, N=2, H=16, W=16),   # projection shortcut (downsample)
        dict(cin=4, cout=4, stride=1, N=2, H=16, W=16),   # identity shortcut
    ]
    for ci, cfg in enumerate(cases):
        kp, kx, key = jax.random.split(key, 3)
        proj = cfg["stride"] != 1 or cfg["cin"] != cfg["cout"]
        params = _make_params(kp, cfg["cin"], cfg["cout"], proj)
        x = jax.random.normal(kx, (cfg["N"], cfg["cin"], cfg["H"], cfg["W"]), jnp.float32)

        out = jax.block_until_ready(fwd(x, params, stride=cfg["stride"]))
        assert out.shape == (cfg["N"], cfg["cout"],
                             cfg["H"] // cfg["stride"], cfg["W"] // cfg["stride"]), out.shape

        # 1) tight check vs a precision-matched reference (bf16 MXU inputs + bf16
        #    intermediate storage, f32 accumulation -- same trade-off as the kernel)
        ref_m = jax.block_until_ready(
            _ref_forward(x, params, cfg["stride"], jnp.bfloat16, match_bf16=True))
        assert jnp.allclose(out, ref_m, rtol=3e-2, atol=3e-2), \
            (ci, float(jnp.max(jnp.abs(out - ref_m))))

        # 2) sanity vs the exact f32 spec (bf16 is a deliberate perf trade-off)
        ref_f = jax.block_until_ready(
            _ref_forward(x, params, cfg["stride"], jnp.float32, match_bf16=False))
        rel = float(jnp.linalg.norm(out - ref_f) / jnp.linalg.norm(ref_f))
        assert rel < 4e-2, (ci, rel)

    print("KERNEL_OK")
</pallas_src>

<mosaic_0001>
module attributes {stable_mosaic.version = 11 : i64} {
  func.func @_mm_stats_kernel(%arg0: i32, %arg1: memref<128x128xbf16, #tpu.memory_space<vmem>>, %arg2: memref<128x128xbf16, #tpu.memory_space<vmem>>, %arg3: memref<128x128xbf16, #tpu.memory_space<vmem>>, %arg4: memref<8x128xf32, #tpu.memory_space<vmem>>, %arg5: memref<8x128xf32, #tpu.memory_space<vmem>>) attributes {dimension_semantics = [#tpu.dimension_semantics<parallel>], iteration_bounds = array<i64: 1>, scalar_prefetch = 0 : i64, scratch_operands = 0 : i64, tpu.core_type = #tpu.core_type<tc>, window_params = [{transform_indices = @transform_0, window_bounds = array<i64: 128, 128>}, {pipeline_mode = #tpu.pipeline_mode<synchronous>, transform_indices = @transform_1, window_bounds = array<i64: 128, 128>}, {transform_indices = @transform_2, window_bounds = array<i64: 128, 128>}, {transform_indices = @transform_3, window_bounds = array<i64: 8, 128>}, {transform_indices = @transform_4, window_bounds = array<i64: 8, 128>}]} {
    %c0 = arith.constant 0 : index
    %c0_0 = arith.constant 0 : index
    %0 = vector.load %arg1[%c0, %c0_0] : memref<128x128xbf16, #tpu.memory_space<vmem>>, vector<128x128xbf16>
    %c0_1 = arith.constant 0 : index
    %c0_2 = arith.constant 0 : index
    %1 = vector.load %arg2[%c0_1, %c0_2] : memref<128x128xbf16, #tpu.memory_space<vmem>>, vector<128x128xbf16>
    %cst = arith.constant dense<0.000000e+00> : vector<128x128xf32>
    %2 = tpu.matmul %0, %1, %cst {dimension_numbers = #tpu.dot_dimension_numbers<[1], [0], [0], [1], [0, 0, 1, 1], [], []>} : vector<128x128xbf16>, vector<128x128xbf16>, vector<128x128xf32> -> vector<128x128xf32>
    %3 = arith.truncf %2 : vector<128x128xf32> to vector<128x128xbf16>
    %c0_3 = arith.constant 0 : index
    %c0_4 = arith.constant 0 : index
    %4 = vector.load %arg3[%c0_3, %c0_4] : memref<128x128xbf16, #tpu.memory_space<vmem>>, vector<128x128xbf16>
    tpu.vector_store %arg3[%c0_3, %c0_4], %3 {strides = array<i32>} : memref<128x128xbf16, #tpu.memory_space<vmem>>, vector<128x128xbf16>,
    %cst_5 = arith.constant dense<0.000000e+00> : vector<128xf32>
    %5 = vector.multi_reduction <add>, %2, %cst_5 [0] : vector<128x128xf32> to vector<128xf32>
    %6 = vector.shape_cast %5 : vector<128xf32> to vector<1x128xf32>
    %7 = vector.shape_cast %6 : vector<1x128xf32> to vector<1x128xf32>
    %8 = vector.broadcast %7 : vector<1x128xf32> to vector<8x128xf32>
    %c0_6 = arith.constant 0 : index
    %c0_7 = arith.constant 0 : index
    %9 = vector.load %arg4[%c0_6, %c0_7] : memref<8x128xf32, #tpu.memory_space<vmem>>, vector<8x128xf32>
    tpu.vector_store %arg4[%c0_6, %c0_7], %8 {strides = array<i32>} : memref<8x128xf32, #tpu.memory_space<vmem>>, vector<8x128xf32>,
    %10 = arith.mulf %2, %2 : vector<128x128xf32>
    %cst_8 = arith.constant dense<0.000000e+00> : vector<128xf32>
    %11 = vector.multi_reduction <add>, %10, %cst_8 [0] : vector<128x128xf32> to vector<128xf32>
    %12 = vector.shape_cast %11 : vector<128xf32> to vector<1x128xf32>
    %13 = vector.shape_cast %12 : vector<1x128xf32> to vector<1x128xf32>
    %14 = vector.broadcast %13 : vector<1x128xf32> to vector<8x128xf32>
    %c0_9 = arith.constant 0 : index
    %c0_10 = arith.constant 0 : index
    %15 = vector.load %arg5[%c0_9, %c0_10] : memref<8x128xf32, #tpu.memory_space<vmem>>, vector<8x128xf32>
    tpu.vector_store %arg5[%c0_9, %c0_10], %14 {strides = array<i32>} : memref<8x128xf32, #tpu.memory_space<vmem>>, vector<8x128xf32>,
    return
  }
  func.func @transform_0(%arg0: i32) -> (i32, i32) {
    %c0_i32 = arith.constant 0 : i32
    %c0_i32_0 = arith.constant 0 : i32
    return %arg0, %c0_i32 : i32, i32
  }
  func.func @transform_1(%arg0: i32) -> (i32, i32) {
    %c0_i32 = arith.constant 0 : i32
    %c0_i32_0 = arith.constant 0 : i32
    %c0_i32_1 = arith.constant 0 : i32
    return %c0_i32, %c0_i32_0 : i32, i32
  }
  func.func @transform_2(%arg0: i32) -> (i32, i32) {
    %c0_i32 = arith.constant 0 : i32
    %c0_i32_0 = arith.constant 0 : i32
    return %arg0, %c0_i32 : i32, i32
  }
  func.func @transform_3(%arg0: i32) -> (i32, i32) {
    %c0_i32 = arith.constant 0 : i32
    %c0_i32_0 = arith.constant 0 : i32
    return %arg0, %c0_i32 : i32, i32
  }
  func.func @transform_4(%arg0: i32) -> (i32, i32) {
    %c0_i32 = arith.constant 0 : i32
    %c0_i32_0 = arith.constant 0 : i32
    return %arg0, %c0_i32 : i32, i32
  }
}

module attributes {stable_mosaic.version = 11 : i64} {
  func.func @_bn_relu_kernel(%arg0: i32, %arg1: memref<128x128xbf16, #tpu.memory_space<vmem>>, %arg2: memref<1x128xf32, #tpu.memory_space<vmem>>, %arg3: memref<1x128xf32, #tpu.memory_space<vmem>>, %arg4: memref<128x128xbf16, #tpu.memory_space<vmem>>) attributes {dimension_semantics = [#tpu.dimension_semantics<parallel>], iteration_bounds = array<i64: 1>, scalar_prefetch = 0 : i64, scratch_operands = 0 : i64, tpu.core_type = #tpu.core_type<tc>, window_params = [{transform_indices = @transform_0, window_bounds = array<i64: 128, 128>}, {pipeline_mode = #tpu.pipeline_mode<synchronous>, transform_indices = @transform_1, window_bounds = array<i64: 1, 128>}, {pipeline_mode = #tpu.pipeline_mode<synchronous>, transform_indices = @transform_2, window_bounds = array<i64: 1, 128>}, {transform_indices = @transform_3, window_bounds = array<i64: 128, 128>}]} {
    %c0 = arith.constant 0 : index
    %c0_0 = arith.constant 0 : index
    %0 = vector.load %arg1[%c0, %c0_0] : memref<128x128xbf16, #tpu.memory_space<vmem>>, vector<128x128xbf16>
    %1 = arith.extf %0 : vector<128x128xbf16> to vector<128x128xf32>
    %c0_1 = arith.constant 0 : index
    %c0_2 = arith.constant 0 : index
    %2 = vector.load %arg2[%c0_1, %c0_2] : memref<1x128xf32, #tpu.memory_space<vmem>>, vector<1x128xf32>
    %3 = vector.broadcast %2 : vector<1x128xf32> to vector<128x128xf32>
    %4 = arith.mulf %1, %3 : vector<128x128xf32>
    %c0_3 = arith.constant 0 : index
    %c0_4 = arith.constant 0 : index
    %5 = vector.load %arg3[%c0_3, %c0_4] : memref<1x128xf32, #tpu.memory_space<vmem>>, vector<1x128xf32>
    %6 = vector.broadcast %5 : vector<1x128xf32> to vector<128x128xf32>
    %7 = arith.addf %4, %6 : vector<128x128xf32>
    %cst = arith.constant 0.000000e+00 : f32
    %8 = vector.broadcast %cst : f32 to vector<128x128xf32>
    %9 = arith.maximumf %7, %8 : vector<128x128xf32>
    %10 = arith.truncf %9 : vector<128x128xf32> to vector<128x128xbf16>
    %c0_5 = arith.constant 0 : index
    %c0_6 = arith.constant 0 : index
    %11 = vector.load %arg4[%c0_5, %c0_6] : memref<128x128xbf16, #tpu.memory_space<vmem>>, vector<128x128xbf16>
    tpu.vector_store %arg4[%c0_5, %c0_6], %10 {strides = array<i32>} : memref<128x128xbf16, #tpu.memory_space<vmem>>, vector<128x128xbf16>,
    return
  }
  func.func @transform_0(%arg0: i32) -> (i32, i32) {
    %c0_i32 = arith.constant 0 : i32
    %c0_i32_0 = arith.constant 0 : i32
    return %arg0, %c0_i32 : i32, i32
  }
  func.func @transform_1(%arg0: i32) -> (i32, i32) {
    %c0_i32 = arith.constant 0 : i32
    %c0_i32_0 = arith.constant 0 : i32
    %c0_i32_1 = arith.constant 0 : i32
    return %c0_i32, %c0_i32_0 : i32, i32
  }
  func.func @transform_2(%arg0: i32) -> (i32, i32) {
    %c0_i32 = arith.constant 0 : i32
    %c0_i32_0 = arith.constant 0 : i32
    %c0_i32_1 = arith.constant 0 : i32
    return %c0_i32, %c0_i32_0 : i32, i32
  }
  func.func @transform_3(%arg0: i32) -> (i32, i32) {
    %c0_i32 = arith.constant 0 : i32
    %c0_i32_0 = arith.constant 0 : i32
    return %arg0, %c0_i32 : i32, i32
  }
}

module attributes {stable_mosaic.version = 11 : i64} {
  func.func @_tapconv_kernel(%arg0: i32, %arg1: i32, %arg2: memref<1x10x10x128xbf16, #tpu.memory_space<vmem>>, %arg3: memref<9x128x128xbf16, #tpu.memory_space<vmem>>, %arg4: memref<64x128xbf16, #tpu.memory_space<vmem>>, %arg5: memref<8x128xf32, #tpu.memory_space<vmem>>, %arg6: memref<8x128xf32, #tpu.memory_space<vmem>>) attributes {dimension_semantics = [#tpu.dimension_semantics<parallel>, #tpu.dimension_semantics<parallel>], iteration_bounds = array<i64: 1, 2>, scalar_prefetch = 0 : i64, scratch_operands = 0 : i64, tpu.core_type = #tpu.core_type<tc>, window_params = [{transform_indices = @transform_0, window_bounds = array<i64: 1, 10, 10, 128>}, {transform_indices = @transform_1, window_bounds = array<i64: 9, 128, 128>}, {transform_indices = @transform_2, window_bounds = array<i64: 64, 128>}, {transform_indices = @transform_3, window_bounds = array<i64: 8, 128>}, {transform_indices = @transform_4, window_bounds = array<i64: 8, 128>}]} {
    %c0 = arith.constant 0 : index
    %c0_0 = arith.constant 0 : index
    %c0_1 = arith.constant 0 : index
    %c0_2 = arith.constant 0 : index
    %0 = vector.load %arg2[%c0, %c0_0, %c0_1, %c0_2] : memref<1x10x10x128xbf16, #tpu.memory_space<vmem>>, vector<1x10x10x128xbf16>
    %1 = vector.shape_cast %0 : vector<1x10x10x128xbf16> to vector<10x10x128xbf16>
    %cst = arith.constant 0.000000e+00 : f32
    %2 = vector.broadcast %cst : f32 to vector<64x128xf32>
    %3 = vector.extract_strided_slice %1 {offsets = [0, 0, 0], sizes = [8, 8, 128], strides = [1, 1, 1]} : vector<10x10x128xbf16> to vector<8x8x128xbf16>
    %4 = vector.shape_cast %3 : vector<8x8x128xbf16> to vector<64x128xbf16>
    %c0_3 = arith.constant 0 : index
    %c0_4 = arith.constant 0 : index
    %c0_5 = arith.constant 0 : index
    %5 = vector.load %arg3[%c0_3, %c0_4, %c0_5] : memref<9x128x128xbf16, #tpu.memory_space<vmem>>, vector<1x128x128xbf16>
    %6 = vector.shape_cast %5 : vector<1x128x128xbf16> to vector<128x128xbf16>
    %cst_6 = arith.constant dense<0.000000e+00> : vector<64x128xf32>
    %7 = tpu.matmul %4, %6, %cst_6 {dimension_numbers = #tpu.dot_dimension_numbers<[1], [0], [0], [1], [0, 0, 1, 1], [], []>} : vector<64x128xbf16>, vector<128x128xbf16>, vector<64x128xf32> -> vector<64x128xf32>
    %8 = arith.addf %2, %7 : vector<64x128xf32>
    %9 = vector.extract_strided_slice %1 {offsets = [0, 1, 0], sizes = [8, 8, 128], strides = [1, 1, 1]} : vector<10x10x128xbf16> to vector<8x8x128xbf16>
    %10 = vector.shape_cast %9 : vector<8x8x128xbf16> to vector<64x128xbf16>
    %c1 = arith.constant 1 : index
    %c0_7 = arith.constant 0 : index
    %c0_8 = arith.constant 0 : index
    %11 = vector.load %arg3[%c1, %c0_7, %c0_8] : memref<9x128x128xbf16, #tpu.memory_space<vmem>>, vector<1x128x128xbf16>
    %12 = vector.shape_cast %11 : vector<1x128x128xbf16> to vector<128x128xbf16>
    %cst_9 = arith.constant dense<0.000000e+00> : vector<64x128xf32>
    %13 = tpu.matmul %10, %12, %cst_9 {dimension_numbers = #tpu.dot_dimension_numbers<[1], [0], [0], [1], [0, 0, 1, 1], [], []>} : vector<64x128xbf16>, vector<128x128xbf16>, vector<64x128xf32> -> vector<64x128xf32>
    %14 = arith.addf %8, %13 : vector<64x128xf32>
    %15 = vector.extract_strided_slice %1 {offsets = [0, 2, 0], sizes = [8, 8, 128], strides = [1, 1, 1]} : vector<10x10x128xbf16> to vector<8x8x128xbf16>
    %16 = vector.shape_cast %15 : vector<8x8x128xbf16> to vector<64x128xbf16>
    %c2 = arith.constant 2 : index
    %c0_10 = arith.constant 0 : index
    %c0_11 = arith.constant 0 : index
    %17 = vector.load %arg3[%c2, %c0_10, %c0_11] : memref<9x128x128xbf16, #tpu.memory_space<vmem>>, vector<1x128x128xbf16>
    %18 = vector.shape_cast %17 : vector<1x128x128xbf16> to vector<128x128xbf16>
    %cst_12 = arith.constant dense<0.000000e+00> : vector<64x128xf32>
    %19 = tpu.matmul %16, %18, %cst_12 {dimension_numbers = #tpu.dot_dimension_numbers<[1], [0], [0], [1], [0, 0, 1, 1], [], []>} : vector<64x128xbf16>, vector<128x128xbf16>, vector<64x128xf32> -> vector<64x128xf32>
    %20 = arith.addf %14, %19 : vector<64x128xf32>
    %21 = vector.extract_strided_slice %1 {offsets = [1, 0, 0], sizes = [8, 8, 128], strides = [1, 1, 1]} : vector<10x10x128xbf16> to vector<8x8x128xbf16>
    %22 = vector.shape_cast %21 : vector<8x8x128xbf16> to vector<64x128xbf16>
    %c3 = arith.constant 3 : index
    %c0_13 = arith.constant 0 : index
    %c0_14 = arith.constant 0 : index
    %23 = vector.load %arg3[%c3, %c0_13, %c0_14] : memref<9x128x128xbf16, #tpu.memory_space<vmem>>, vector<1x128x128xbf16>
    %24 = vector.shape_cast %23 : vector<1x128x128xbf16> to vector<128x128xbf16>
    %cst_15 = arith.constant dense<0.000000e+00> : vector<64x128xf32>
    %25 = tpu.matmul %22, %24, %cst_15 {dimension_numbers = #tpu.dot_dimension_numbers<[1], [0], [0], [1], [0, 0, 1, 1], [], []>} : vector<64x128xbf16>, vector<128x128xbf16>, vector<64x128xf32> -> vector<64x128xf32>
    %26 = arith.addf %20, %25 : vector<64x128xf32>
    %27 = vector.extract_strided_slice %1 {offsets = [1, 1, 0], sizes = [8, 8, 128], strides = [1, 1, 1]} : vector<10x10x128xbf16> to vector<8x8x128xbf16>
    %28 = vector.shape_cast %27 : vector<8x8x128xbf16> to vector<64x128xbf16>
    %c4 = arith.constant 4 : index
    %c0_16 = arith.constant 0 : index
    %c0_17 = arith.constant 0 : index
    %29 = vector.load %arg3[%c4, %c0_16, %c0_17] : memref<9x128x128xbf16, #tpu.memory_space<vmem>>, vector<1x128x128xbf16>
    %30 = vector.shape_cast %29 : vector<1x128x128xbf16> to vector<128x128xbf16>
    %cst_18 = arith.constant dense<0.000000e+00> : vector<64x128xf32>
    %31 = tpu.matmul %28, %30, %cst_18 {dimension_numbers = #tpu.dot_dimension_numbers<[1], [0], [0], [1], [0, 0, 1, 1], [], []>} : vector<64x128xbf16>, vector<128x128xbf16>, vector<64x128xf32> -> vector<64x128xf32>
    %32 = arith.addf %26, %31 : vector<64x128xf32>
    %33 = vector.extract_strided_slice %1 {offsets = [1, 2, 0], sizes = [8, 8, 128], strides = [1, 1, 1]} : vector<10x10x128xbf16> to vector<8x8x128xbf16>
    %34 = vector.shape_cast %33 : vector<8x8x128xbf16> to vector<64x128xbf16>
    %c5 = arith.constant 5 : index
    %c0_19 = arith.constant 0 : index
    %c0_20 = arith.constant 0 : index
    %35 = vector.load %arg3[%c5, %c0_19, %c0_20] : memref<9x128x128xbf16, #tpu.memory_space<vmem>>, vector<1x128x128xbf16>
    %36 = vector.shape_cast %35 : vector<1x128x128xbf16> to vector<128x128xbf16>
    %cst_21 = arith.constant dense<0.000000e+00> : vector<64x128xf32>
    %37 = tpu.matmul %34, %36, %cst_21 {dimension_numbers = #tpu.dot_dimension_numbers<[1], [0], [0], [1], [0, 0, 1, 1], [], []>} : vector<64x128xbf16>, vector<128x128xbf16>, vector<64x128xf32> -> vector<64x128xf32>
    %38 = arith.addf %32, %37 : vector<64x128xf32>
    %39 = vector.extract_strided_slice %1 {offsets = [2, 0, 0], sizes = [8, 8, 128], strides = [1, 1, 1]} : vector<10x10x128xbf16> to vector<8x8x128xbf16>
    %40 = vector.shape_cast %39 : vector<8x8x128xbf16> to vector<64x128xbf16>
    %c6 = arith.constant 6 : index
    %c0_22 = arith.constant 0 : index
    %c0_23 = arith.constant 0 : index
    %41 = vector.load %arg3[%c6, %c0_22, %c0_23] : memref<9x128x128xbf16, #tpu.memory_space<vmem>>, vector<1x128x128xbf16>
    %42 = vector.shape_cast %41 : vector<1x128x128xbf16> to vector<128x128xbf16>
    %cst_24 = arith.constant dense<0.000000e+00> : vector<64x128xf32>
    %43 = tpu.matmul %40, %42, %cst_24 {dimension_numbers = #tpu.dot_dimension_numbers<[1], [0], [0], [1], [0, 0, 1, 1], [], []>} : vector<64x128xbf16>, vector<128x128xbf16>, vector<64x128xf32> -> vector<64x128xf32>
    %44 = arith.addf %38, %43 : vector<64x128xf32>
    %45 = vector.extract_strided_slice %1 {offsets = [2, 1, 0], sizes = [8, 8, 128], strides = [1, 1, 1]} : vector<10x10x128xbf16> to vector<8x8x128xbf16>
    %46 = vector.shape_cast %45 : vector<8x8x128xbf16> to vector<64x128xbf16>
    %c7 = arith.constant 7 : index
    %c0_25 = arith.constant 0 : index
    %c0_26 = arith.constant 0 : index
    %47 = vector.load %arg3[%c7, %c0_25, %c0_26] : memref<9x128x128xbf16, #tpu.memory_space<vmem>>, vector<1x128x128xbf16>
    %48 = vector.shape_cast %47 : vector<1x128x128xbf16> to vector<128x128xbf16>
    %cst_27 = arith.constant dense<0.000000e+00> : vector<64x128xf32>
    %49 = tpu.matmul %46, %48, %cst_27 {dimension_numbers = #tpu.dot_dimension_numbers<[1], [0], [0], [1], [0, 0, 1, 1], [], []>} : vector<64x128xbf16>, vector<128x128xbf16>, vector<64x128xf32> -> vector<64x128xf32>
    %50 = arith.addf %44, %49 : vector<64x128xf32>
    %51 = vector.extract_strided_slice %1 {offsets = [2, 2, 0], sizes = [8, 8, 128], strides = [1, 1, 1]} : vector<10x10x128xbf16> to vector<8x8x128xbf16>
    %52 = vector.shape_cast %51 : vector<8x8x128xbf16> to vector<64x128xbf16>
    %c8 = arith.constant 8 : index
    %c0_28 = arith.constant 0 : index
    %c0_29 = arith.constant 0 : index
    %53 = vector.load %arg3[%c8, %c0_28, %c0_29] : memref<9x128x128xbf16, #tpu.memory_space<vmem>>, vector<1x128x128xbf16>
    %54 = vector.shape_cast %53 : vector<1x128x128xbf16> to vector<128x128xbf16>
    %cst_30 = arith.constant dense<0.000000e+00> : vector<64x128xf32>
    %55 = tpu.matmul %52, %54, %cst_30 {dimension_numbers = #tpu.dot_dimension_numbers<[1], [0], [0], [1], [0, 0, 1, 1], [], []>} : vector<64x128xbf16>, vector<128x128xbf16>, vector<64x128xf32> -> vector<64x128xf32>
    %56 = arith.addf %50, %55 : vector<64x128xf32>
    %57 = arith.truncf %56 : vector<64x128xf32> to vector<64x128xbf16>
    %c0_31 = arith.constant 0 : index
    %c0_32 = arith.constant 0 : index
    %58 = vector.load %arg4[%c0_31, %c0_32] : memref<64x128xbf16, #tpu.memory_space<vmem>>, vector<64x128xbf16>
    tpu.vector_store %arg4[%c0_31, %c0_32], %57 {strides = array<i32>} : memref<64x128xbf16, #tpu.memory_space<vmem>>, vector<64x128xbf16>,
    %cst_33 = arith.constant dense<0.000000e+00> : vector<128xf32>
    %59 = vector.multi_reduction <add>, %56, %cst_33 [0] : vector<64x128xf32> to vector<128xf32>
    %60 = vector.shape_cast %59 : vector<128xf32> to vector<1x128xf32>
    %61 = vector.shape_cast %60 : vector<1x128xf32> to vector<1x128xf32>
    %62 = vector.broadcast %61 : vector<1x128xf32> to vector<8x128xf32>
    %c0_34 = arith.constant 0 : index
    %c0_35 = arith.constant 0 : index
    %63 = vector.load %arg5[%c0_34, %c0_35] : memref<8x128xf32, #tpu.memory_space<vmem>>, vector<8x128xf32>
    tpu.vector_store %arg5[%c0_34, %c0_35], %62 {strides = array<i32>} : memref<8x128xf32, #tpu.memory_space<vmem>>, vector<8x128xf32>,
    %64 = arith.mulf %56, %56 : vector<64x128xf32>
    %cst_36 = arith.constant dense<0.000000e+00> : vector<128xf32>
    %65 = vector.multi_reduction <add>, %64, %cst_36 [0] : vector<64x128xf32> to vector<128xf32>
    %66 = vector.shape_cast %65 : vector<128xf32> to vector<1x128xf32>
    %67 = vector.shape_cast %66 : vector<1x128xf32> to vector<1x128xf32>
    %68 = vector.broadcast %67 : vector<1x128xf32> to vector<8x128xf32>
    %c0_37 = arith.constant 0 : index
    %c0_38 = arith.constant 0 : index
    %69 = vector.load %arg6[%c0_37, %c0_38] : memref<8x128xf32, #tpu.memory_space<vmem>>, vector<8x128xf32>
    tpu.vector_store %arg6[%c0_37, %c0_38], %68 {strides = array<i32>} : memref<8x128xf32, #tpu.memory_space<vmem>>, vector<8x128xf32>,
    return
  }
  func.func @transform_0(%arg0: i32, %arg1: i32) -> (i32, i32, i32, i32) {
    %c0_i32 = arith.constant 0 : i32
    %c0_i32_0 = arith.constant 0 : i32
    %c0_i32_1 = arith.constant 0 : i32
    %c0_i32_2 = arith.constant 0 : i32
    return %arg1, %c0_i32, %c0_i32_0, %c0_i32_1 : i32, i32, i32, i32
  }
  func.func @transform_1(%arg0: i32, %arg1: i32) -> (i32, i32, i32) {
    %c0_i32 = arith.constant 0 : i32
    %c0_i32_0 = arith.constant 0 : i32
    %c0_i32_1 = arith.constant 0 : i32
    return %c0_i32, %c0_i32_0, %arg0 : i32, i32, i32
  }
  func.func @transform_2(%arg0: i32, %arg1: i32) -> (i32, i32) {
    %c0_i32 = arith.constant 0 : i32
    return %arg1, %arg0 : i32, i32
  }
  func.func @transform_3(%arg0: i32, %arg1: i32) -> (i32, i32) {
    %c0_i32 = arith.constant 0 : i32
    return %arg1, %arg0 : i32, i32
  }
  func.func @transform_4(%arg0: i32, %arg1: i32) -> (i32, i32) {
    %c0_i32 = arith.constant 0 : i32
    return %arg1, %arg0 : i32, i32
  }
}

module attributes {stable_mosaic.version = 11 : i64} {
  func.func @_bn_add_bn_relu_kernel(%arg0: i32, %arg1: memref<128x128xbf16, #tpu.memory_space<vmem>>, %arg2: memref<128x128xbf16, #tpu.memory_space<vmem>>, %arg3: memref<1x128xf32, #tpu.memory_space<vmem>>, %arg4: memref<1x128xf32, #tpu.memory_space<vmem>>, %arg5: memref<1x128xf32, #tpu.memory_space<vmem>>, %arg6: memref<1x128xf32, #tpu.memory_space<vmem>>, %arg7: memref<128x128xf32, #tpu.memory_space<vmem>>) attributes {dimension_semantics = [#tpu.dimension_semantics<parallel>], iteration_bounds = array<i64: 1>, scalar_prefetch = 0 : i64, scratch_operands = 0 : i64, tpu.core_type = #tpu.core_type<tc>, window_params = [{transform_indices = @transform_0, window_bounds = array<i64: 128, 128>}, {transform_indices = @transform_1, window_bounds = array<i64: 128, 128>}, {pipeline_mode = #tpu.pipeline_mode<synchronous>, transform_indices = @transform_2, window_bounds = array<i64: 1, 128>}, {pipeline_mode = #tpu.pipeline_mode<synchronous>, transform_indices = @transform_3, window_bounds = array<i64: 1, 128>}, {pipeline_mode = #tpu.pipeline_mode<synchronous>, transform_indices = @transform_4, window_bounds = array<i64: 1, 128>}, {pipeline_mode = #tpu.pipeline_mode<synchronous>, transform_indices = @transform_5, window_bounds = array<i64: 1, 128>}, {transform_indices = @transform_6, window_bounds = array<i64: 128, 128>}]} {
    %c0 = arith.constant 0 : index
    %c0_0 = arith.constant 0 : index
    %0 = vector.load %arg1[%c0, %c0_0] : memref<128x128xbf16, #tpu.memory_space<vmem>>, vector<128x128xbf16>
    %1 = arith.extf %0 : vector<128x128xbf16> to vector<128x128xf32>
    %c0_1 = arith.constant 0 : index
    %c0_2 = arith.constant 0 : index
    %2 = vector.load %arg3[%c0_1, %c0_2] : memref<1x128xf32, #tpu.memory_space<vmem>>, vector<1x128xf32>
    %3 = vector.broadcast %2 : vector<1x128xf32> to vector<128x128xf32>
    %4 = arith.mulf %1, %3 : vector<128x128xf32>
    %c0_3 = arith.constant 0 : index
    %c0_4 = arith.constant 0 : index
    %5 = vector.load %arg4[%c0_3, %c0_4] : memref<1x128xf32, #tpu.memory_space<vmem>>, vector<1x128xf32>
    %6 = vector.broadcast %5 : vector<1x128xf32> to vector<128x128xf32>
    %7 = arith.addf %4, %6 : vector<128x128xf32>
    %c0_5 = arith.constant 0 : index
    %c0_6 = arith.constant 0 : index
    %8 = vector.load %arg2[%c0_5, %c0_6] : memref<128x128xbf16, #tpu.memory_space<vmem>>, vector<128x128xbf16>
    %9 = arith.extf %8 : vector<128x128xbf16> to vector<128x128xf32>
    %c0_7 = arith.constant 0 : index
    %c0_8 = arith.constant 0 : index
    %10 = vector.load %arg5[%c0_7, %c0_8] : memref<1x128xf32, #tpu.memory_space<vmem>>, vector<1x128xf32>
    %11 = vector.broadcast %10 : vector<1x128xf32> to vector<128x128xf32>
    %12 = arith.mulf %9, %11 : vector<128x128xf32>
    %c0_9 = arith.constant 0 : index
    %c0_10 = arith.constant 0 : index
    %13 = vector.load %arg6[%c0_9, %c0_10] : memref<1x128xf32, #tpu.memory_space<vmem>>, vector<1x128xf32>
    %14 = vector.broadcast %13 : vector<1x128xf32> to vector<128x128xf32>
    %15 = arith.addf %12, %14 : vector<128x128xf32>
    %16 = arith.addf %7, %15 : vector<128x128xf32>
    %cst = arith.constant 0.000000e+00 : f32
    %17 = vector.broadcast %cst : f32 to vector<128x128xf32>
    %18 = arith.maximumf %16, %17 : vector<128x128xf32>
    %c0_11 = arith.constant 0 : index
    %c0_12 = arith.constant 0 : index
    %19 = vector.load %arg7[%c0_11, %c0_12] : memref<128x128xf32, #tpu.memory_space<vmem>>, vector<128x128xf32>
    tpu.vector_store %arg7[%c0_11, %c0_12], %18 {strides = array<i32>} : memref<128x128xf32, #tpu.memory_space<vmem>>, vector<128x128xf32>,
    return
  }
  func.func @transform_0(%arg0: i32) -> (i32, i32) {
    %c0_i32 = arith.constant 0 : i32
    %c0_i32_0 = arith.constant 0 : i32
    return %arg0, %c0_i32 : i32, i32
  }
  func.func @transform_1(%arg0: i32) -> (i32, i32) {
    %c0_i32 = arith.constant 0 : i32
    %c0_i32_0 = arith.constant 0 : i32
    return %arg0, %c0_i32 : i32, i32
  }
  func.func @transform_2(%arg0: i32) -> (i32, i32) {
    %c0_i32 = arith.constant 0 : i32
    %c0_i32_0 = arith.constant 0 : i32
    %c0_i32_1 = arith.constant 0 : i32
    return %c0_i32, %c0_i32_0 : i32, i32
  }
  func.func @transform_3(%arg0: i32) -> (i32, i32) {
    %c0_i32 = arith.constant 0 : i32
    %c0_i32_0 = arith.constant 0 : i32
    %c0_i32_1 = arith.constant 0 : i32
    return %c0_i32, %c0_i32_0 : i32, i32
  }
  func.func @transform_4(%arg0: i32) -> (i32, i32) {
    %c0_i32 = arith.constant 0 : i32
    %c0_i32_0 = arith.constant 0 : i32
    %c0_i32_1 = arith.constant 0 : i32
    return %c0_i32, %c0_i32_0 : i32, i32
  }
  func.func @transform_5(%arg0: i32) -> (i32, i32) {
    %c0_i32 = arith.constant 0 : i32
    %c0_i32_0 = arith.constant 0 : i32
    %c0_i32_1 = arith.constant 0 : i32
    return %c0_i32, %c0_i32_0 : i32, i32
  }
  func.func @transform_6(%arg0: i32) -> (i32, i32) {
    %c0_i32 = arith.constant 0 : i32
    %c0_i32_0 = arith.constant 0 : i32
    return %arg0, %c0_i32 : i32, i32
  }
}

</mosaic_0001>

<bundles_post_ra>
// kernel: residual_block_forward.5
= control target key start
LH: loop header
LB: loop body
LE: loop exit
PB: predicated region body
PF: predicated region fallthrough
CT: control target
= control target key end

     0   :  { %s555_s1 = inlined_call_operand.vmem [shape: bf16[128,128], index: 1, kind: input, shape index: {}]   ;;  %s556_s0 = inlined_call_operand.vmem [shape: bf16[128,128], index: 0, kind: input, shape index: {}]   ;;  %s557_s2 = inlined_call_operand.vmem [shape: bf16[128,128], index: 2, kind: output, shape index: {0}]   ;;  %s558_s3 = inlined_call_operand.vmem [shape: f32[8,128], index: 3, kind: output, shape index: {1}]   ;;  %s559_s4 = inlined_call_operand.vmem [shape: f32[8,128], index: 4, kind: output, shape index: {2}]  }
   0x1   :  { %v374_v0 = vld [vmem:[%s555_s1 + $0x38] sm:$0xff]  ;;  %v373_v1 = vld [vmem:[%s555_s1 + $0x30] sm:$0xff]  ;;  %v372_v2 = vld [vmem:[%s555_s1 + $0x28] sm:$0xff] }
   0x2   :  { %142 = vmatpush.bf16.msra.mxu0 %v374_v0  ;;  %422 = vmatpush.bf16.msra.mxu1 %v374_v0  ;;  %v371_v3 = vld [vmem:[%s555_s1 + $0x20] sm:$0xff]  ;;  %v370_v4 = vld [vmem:[%s555_s1 + $0x18] sm:$0xff]  ;;  %v369_v5 = vld [vmem:[%s555_s1 + $0x10] sm:$0xff] }
   0x3   :  { %423 = vmatpush.bf16.msra.mxu2 %v374_v0  ;;  %424 = vmatpush.bf16.msra.mxu3 %v374_v0  ;;  %v368_v6 = vld [vmem:[%s555_s1 + $0x8] sm:$0xff]  ;;  %v367_v7 = vld [vmem:[%s555_s1] sm:$0xff]  ;;  %v361_v9 = vld [vmem:[%s556_s0 + $0x10] sm:$0xff] }
   0x4   :  { %v359_v8 = vld [vmem:[%s556_s0] sm:$0xff]  ;;  %v365_v11 = vld [vmem:[%s556_s0 + $0x30] sm:$0xff]  ;;  %v360_v12 = vld [vmem:[%s556_s0 + $0x8] sm:$0xff] }
   0x5   :  { %v363_v10 = vld [vmem:[%s556_s0 + $0x20] sm:$0xff]  ;;  %v362_v13 = vld [vmem:[%s556_s0 + $0x18] sm:$0xff]  ;;  %v364_v14 = vld [vmem:[%s556_s0 + $0x28] sm:$0xff] }
   0x6   :  { %143 = vmatpush.bf16.msra.mxu0 %v373_v1  ;;  %425 = vmatpush.bf16.msra.mxu1 %v373_v1  ;;  %v366_v15 = vld [vmem:[%s556_s0 + $0x38] sm:$0xff] }
   0x7   :  { %426 = vmatpush.bf16.msra.mxu2 %v373_v1  ;;  %427 = vmatpush.bf16.msra.mxu3 %v373_v1 }
   0xa   :  { %144 = vmatpush.bf16.msra.mxu0 %v372_v2  ;;  %428 = vmatpush.bf16.msra.mxu1 %v372_v2 }
   0xb   :  { %429 = vmatpush.bf16.msra.mxu2 %v372_v2  ;;  %430 = vmatpush.bf16.msra.mxu3 %v372_v2 }
   0xe   :  { %145 = vmatpush.bf16.msra.mxu0 %v371_v3  ;;  %431 = vmatpush.bf16.msra.mxu1 %v371_v3 }
   0xf   :  { %432 = vmatpush.bf16.msra.mxu2 %v371_v3  ;;  %433 = vmatpush.bf16.msra.mxu3 %v371_v3 }
  0x12   :  { %146 = vmatpush.bf16.msra.mxu0 %v370_v4  ;;  %434 = vmatpush.bf16.msra.mxu1 %v370_v4 }
  0x13   :  { %435 = vmatpush.bf16.msra.mxu2 %v370_v4  ;;  %436 = vmatpush.bf16.msra.mxu3 %v370_v4 }
  0x16   :  { %147 = vmatpush.bf16.msra.mxu0 %v369_v5  ;;  %437 = vmatpush.bf16.msra.mxu1 %v369_v5 }
  0x17   :  { %438 = vmatpush.bf16.msra.mxu2 %v369_v5  ;;  %439 = vmatpush.bf16.msra.mxu3 %v369_v5 }
  0x1a   :  { %148 = vmatpush.bf16.msra.mxu0 %v368_v6  ;;  %440 = vmatpush.bf16.msra.mxu1 %v368_v6 }
  0x1b   :  { %441 = vmatpush.bf16.msra.mxu2 %v368_v6  ;;  %442 = vmatpush.bf16.msra.mxu3 %v368_v6 }
  0x1e   :  { %149 = vmatpush.bf16.msra.mxu0 %v367_v7  ;;  %443 = vmatpush.bf16.msra.mxu1 %v367_v7 }
  0x1f   :  { %444 = vmatpush.bf16.msra.mxu2 %v367_v7  ;;  %445 = vmatpush.bf16.msra.mxu3 %v367_v7 }
  0x21   :  { %150 = vmatmul.bf16.vlgmr.msra.gmra.mxu0 %v359_v8  ;;  %160 = vmatmul.bf16.vlgmr.msra.gmra.mxu1 %v361_v9 }
  0x22   :  { %170 = vmatmul.bf16.vlgmr.msra.gmra.mxu2 %v363_v10  ;;  %180 = vmatmul.bf16.vlgmr.msra.gmra.mxu3 %v365_v11 }
  0x31   :  { %155 = vmatmul.bf16.gmra.mxu0 %v360_v12  ;;  %165 = vmatmul.bf16.gmra.mxu1 %v362_v13 }
  0x32   :  { %175 = vmatmul.bf16.gmra.mxu2 %v364_v14  ;;  %185 = vmatmul.bf16.gmra.mxu3 %v366_v15 }
  0x9e   :  { %v151_v16 = vpop.f32.mrf.mxu0  ;;  %v161_v17 = vpop.f32.mrf.mxu1 }
  0x9f   :  { %v245_v31 = vmul.f32 %v151_v16, %v151_v16  ;;  %v249_v45 = vmul.f32 %v161_v17, %v161_v17 }
  0xa5   :  { %v171_v18 = vpop.f32.mrf.mxu2  ;;  %v519_v19 = vpop.f32.mrf.mxu3 }
  0xa6   :  { %v153_v20 = vpop.f32.mrf.mxu0  ;;  %v163_v21 = vpop.f32.mrf.mxu1  ;;  %v253_v61 = vmul.f32 %v171_v18, %v171_v18  ;;  %v257_v9 = vmul.f32 %v519_v19, %v519_v19 }
  0xa7   :  { %v378_v22 = vpack.c.bf16 %v153_v20, %v151_v16  ;;  %v388_v23 = vpack.c.bf16 %v163_v21, %v161_v17  ;;  %v246_v30 = vmul.f32 %v153_v20, %v153_v20  ;;  %v223_v33 = vadd.f32 %v153_v20, %v151_v16 }
  0xa8   :  { %v250_v48 = vmul.f32 %v163_v21, %v163_v21 }
  0xa9   :  { %379 = vst [vmem:[%s557_s2] sm:$0xff] %v378_v22   ;;  %v261_v34 = vadd.f32 %v246_v30, %v245_v31 }
  0xaa   :  { %416 = vst [vmem:[%s557_s2 + $0x10] sm:$0xff] %v388_v23  }
  0xad   :  { %v173_v24 = vpop.f32.mrf.mxu2  ;;  %v183_v25 = vpop.f32.mrf.mxu3 }
  0xae   :  { %v156_v26 = vpop.f32.mrf.mxu0  ;;  %v166_v27 = vpop.f32.mrf.mxu1  ;;  %v398_v28 = vpack.c.bf16 %v173_v24, %v171_v18  ;;  %v408_v29 = vpack.c.bf16 %v183_v25, %v519_v19  ;;  %v254_v0 = vmul.f32 %v173_v24, %v173_v24  ;;  %v258_v12 = vmul.f32 %v183_v25, %v183_v25 }
  0xaf   :  { %v247_v32 = vmul.f32 %v156_v26, %v156_v26  ;;  %v224_v35 = vadd.f32 %v223_v33, %v156_v26  ;;  %v251_v51 = vmul.f32 %v166_v27, %v166_v27 }
  0xb0   :  { %418 = vst [vmem:[%s557_s2 + $0x20] sm:$0xff] %v398_v28  }
  0xb1   :  { %420 = vst [vmem:[%s557_s2 + $0x30] sm:$0xff] %v408_v29   ;;  %v262_v38 = vadd.f32 %v261_v34, %v247_v32 }
  0xb5   :  { %v176_v36 = vpop.f32.mrf.mxu2  ;;  %v186_v37 = vpop.f32.mrf.mxu3 }
  0xb6   :  { %v158_v39 = vpop.f32.mrf.mxu0  ;;  %v168_v40 = vpop.f32.mrf.mxu1  ;;  %v255_v4 = vmul.f32 %v176_v36, %v176_v36  ;;  %v259_v16 = vmul.f32 %v186_v37, %v186_v37 }
  0xb7   :  { %v383_v41 = vpack.c.bf16 %v158_v39, %v156_v26  ;;  %v225_v42 = vadd.f32 %v224_v35, %v158_v39  ;;  %v248_v43 = vmul.f32 %v158_v39, %v158_v39  ;;  %v393_v44 = vpack.c.bf16 %v168_v40, %v166_v27 }
  0xb8   :  { %v252_v59 = vmul.f32 %v168_v40, %v168_v40 }
  0xb9   :  { %415 = vst [vmem:[%s557_s2 + $0x8] sm:$0xff] %v383_v41   ;;  %v226_v46 = vadd.f32 %v225_v42, %v161_v17  ;;  %v263_v47 = vadd.f32 %v262_v38, %v248_v43 }
  0xba   :  { %417 = vst [vmem:[%s557_s2 + $0x18] sm:$0xff] %v393_v44  }
  0xbb   :  { %v264_v49 = vadd.f32 %v263_v47, %v249_v45  ;;  %v227_v50 = vadd.f32 %v226_v46, %v163_v21 }
  0xbd   :  { %v228_v52 = vadd.f32 %v227_v50, %v166_v27  ;;  %v265_v53 = vadd.f32 %v264_v49, %v250_v48  ;;  %v178_v54 = vpop.f32.mrf.mxu2  ;;  %v188_v55 = vpop.f32.mrf.mxu3 }
  0xbe   :  { %v403_v56 = vpack.c.bf16 %v178_v54, %v176_v36  ;;  %v413_v57 = vpack.c.bf16 %v188_v55, %v186_v37  ;;  %v256_v8 = vmul.f32 %v178_v54, %v178_v54  ;;  %v260_v21 = vmul.f32 %v188_v55, %v188_v55 }
  0xbf   :  { %v229_v58 = vadd.f32 %v228_v52, %v168_v40  ;;  %v266_v60 = vadd.f32 %v265_v53, %v251_v51 }
  0xc0   :  { %419 = vst [vmem:[%s557_s2 + $0x28] sm:$0xff] %v403_v56  }
  0xc1   :  { %v230_v62 = vadd.f32 %v229_v58, %v171_v18  ;;  %v267_v63 = vadd.f32 %v266_v60, %v252_v59  ;;  %421 = vst [vmem:[%s557_s2 + $0x38] sm:$0xff] %v413_v57  }
  0xc3   :  { %v268_v1 = vadd.f32 %v267_v63, %v253_v61  ;;  %v231_v2 = vadd.f32 %v230_v62, %v173_v24 }
  0xc5   :  { %v232_v3 = vadd.f32 %v231_v2, %v176_v36  ;;  %v269_v5 = vadd.f32 %v268_v1, %v254_v0 }
  0xc7   :  { %v270_v6 = vadd.f32 %v269_v5, %v255_v4  ;;  %v233_v7 = vadd.f32 %v232_v3, %v178_v54 }
  0xc9   :  { %v234_v10 = vadd.f32 %v233_v7, %v519_v19  ;;  %v271_v11 = vadd.f32 %v270_v6, %v256_v8 }
  0xcb   :  { %v272_v13 = vadd.f32 %v271_v11, %v257_v9  ;;  %v235_v14 = vadd.f32 %v234_v10, %v183_v25 }
  0xcd   :  { %v236_v15 = vadd.f32 %v235_v14, %v186_v37  ;;  %v273_v17 = vadd.f32 %v272_v13, %v258_v12 }
  0xcf   :  { %v274_v18 = vadd.f32 %v273_v17, %v259_v16  ;;  %v237_v20 = vadd.f32 %v236_v15, %v188_v55 }
  0xd1   :  { %v238_v22 = vrot.slane %v237_v20, 4  ;;  %v275_v23 = vadd.f32 %v274_v18, %v260_v21 }
  0xd3   :  { %v239_v24 = vadd.f32 %v238_v22, %v237_v20  ;;  %v276_v26 = vrot.slane %v275_v23, 4 }
  0xd5   :  { %v240_v27 = vrot.slane %v239_v24, 2  ;;  %v277_v28 = vadd.f32 %v276_v26, %v275_v23 }
  0xd7   :  { %v241_v29 = vadd.f32 %v240_v27, %v239_v24  ;;  %v278_v30 = vrot.slane %v277_v28, 2 }
  0xd9   :  { %v242_v31 = vrot.slane %v241_v29, 1  ;;  %v279_v19 = vadd.f32 %v278_v30, %v277_v28 }
  0xdb   :  { %v243_v32 = vadd.f32 %v242_v31, %v241_v29  ;;  %v280_v33 = vrot.slane %v279_v19, 1 }
  0xdd   :  { %244 = vst [vmem:[%s558_s3] sm:$0xff] %v243_v32  ;;  %v281_v25 = vadd.f32 %v280_v33, %v279_v19 }
  0xdf   :  { %282 = vst [vmem:[%s559_s4] sm:$0xff] %v281_v25 }

// kernel: residual_block_forward.6
= control target key start
LH: loop header
LB: loop body
LE: loop exit
PB: predicated region body
PF: predicated region fallthrough
CT: control target
= control target key end

     0   :  { %s336_s0 = inlined_call_operand.vmem [shape: bf16[128,128], index: 0, kind: input, shape index: {}]   ;;  %s337_s1 = inlined_call_operand.vmem [shape: f32[1,128], index: 1, kind: input, shape index: {}]   ;;  %s338_s2 = inlined_call_operand.vmem [shape: f32[1,128], index: 2, kind: input, shape index: {}]   ;;  %s339_s3 = inlined_call_operand.vmem [shape: bf16[128,128], index: 3, kind: output, shape index: {}]  }
   0x1   :  { %v139_v0 = vld [vmem:[%s336_s0] sm:$0xff]   ;;  %v210_v5 = vld [vmem:[%s336_s0 + $0x8] sm:$0xff]   ;;  %v211_v8 = vld [vmem:[%s336_s0 + $0x10] sm:$0xff]  }
   0x2   :  { %v252_v1 = vld [vmem:[%s337_s1] ss:$0 sm:$0xff]  ;;  %v140_v2 = vunpack.c.l.bf16 %v139_v0  ;;  %v141_v3 = vunpack.c.h.bf16 %v139_v0  ;;  %v144_v6 = vunpack.c.l.bf16 %v210_v5  ;;  %v145_v7 = vunpack.c.h.bf16 %v210_v5  ;;  %v212_v9 = vld [vmem:[%s336_s0 + $0x18] sm:$0xff]   ;;  %v214_v35 = vld [vmem:[%s336_s0 + $0x28] sm:$0xff]  }
   0x3   :  { %v257_v4 = vld [vmem:[%s338_s2] ss:$0 sm:$0xff]  ;;  %v148_v12 = vunpack.c.l.bf16 %v211_v8  ;;  %v149_v13 = vunpack.c.h.bf16 %v211_v8  ;;  %v152_v16 = vunpack.c.l.bf16 %v212_v9  ;;  %v153_v17 = vunpack.c.h.bf16 %v212_v9  ;;  %v215_v40 = vld [vmem:[%s336_s0 + $0x30] sm:$0xff]   ;;  %v216_v45 = vld [vmem:[%s336_s0 + $0x38] sm:$0xff]  }
   0x4   :  { %v50_v10 = vmul.f32 %v252_v1, %v140_v2  ;;  %v51_v11 = vmul.f32 %v252_v1, %v141_v3  ;;  %v52_v14 = vmul.f32 %v252_v1, %v144_v6  ;;  %v53_v15 = vmul.f32 %v252_v1, %v145_v7  ;;  %v213_v26 = vld [vmem:[%s336_s0 + $0x20] sm:$0xff]  }
   0x5   :  { %v54_v20 = vmul.f32 %v252_v1, %v148_v12  ;;  %v55_v21 = vmul.f32 %v252_v1, %v149_v13  ;;  %v56_v24 = vmul.f32 %v252_v1, %v152_v16  ;;  %v57_v25 = vmul.f32 %v252_v1, %v153_v17 }
   0x6   :  { %v70_v18 = vadd.f32 %v257_v4, %v50_v10  ;;  %v71_v19 = vadd.f32 %v257_v4, %v51_v11  ;;  %v72_v22 = vadd.f32 %v257_v4, %v52_v14  ;;  %v73_v23 = vadd.f32 %v257_v4, %v53_v15 }
   0x7   :  { %v74_v29 = vadd.f32 %v257_v4, %v54_v20  ;;  %v75_v30 = vadd.f32 %v257_v4, %v55_v21  ;;  %v76_v33 = vadd.f32 %v257_v4, %v56_v24  ;;  %v77_v34 = vadd.f32 %v257_v4, %v57_v25 }
   0x8   :  { %v86_v27 = vmax.f32 %v70_v18, 0.0  ;;  %v87_v28 = vmax.f32 %v71_v19, 0.0  ;;  %v88_v31 = vmax.f32 %v72_v22, 0.0  ;;  %v89_v32 = vmax.f32 %v73_v23, 0.0 }
   0x9   :  { %v90_v37 = vmax.f32 %v74_v29, 0.0  ;;  %v91_v38 = vmax.f32 %v75_v30, 0.0  ;;  %v156_v39 = vunpack.c.l.bf16 %v213_v26  ;;  %v92_v42 = vmax.f32 %v76_v33, 0.0 }
   0xa   :  { %v173_v36 = vpack.c.bf16 %v87_v28, %v86_v27  ;;  %v178_v41 = vpack.c.bf16 %v89_v32, %v88_v31  ;;  %v93_v43 = vmax.f32 %v77_v34, 0.0  ;;  %v157_v44 = vunpack.c.h.bf16 %v213_v26 }
   0xb   :  { %v183_v46 = vpack.c.bf16 %v91_v38, %v90_v37  ;;  %v58_v47 = vmul.f32 %v252_v1, %v156_v39  ;;  %v160_v48 = vunpack.c.l.bf16 %v214_v35  ;;  %v161_v49 = vunpack.c.h.bf16 %v214_v35 }
   0xc   :  { %174 = vst [vmem:[%s339_s3] sm:$0xff] %v173_v36   ;;  %v188_v50 = vpack.c.bf16 %v93_v43, %v92_v42  ;;  %v59_v51 = vmul.f32 %v252_v1, %v157_v44  ;;  %v164_v52 = vunpack.c.l.bf16 %v215_v40  ;;  %v165_v53 = vunpack.c.h.bf16 %v215_v40 }
   0xd   :  { %217 = vst [vmem:[%s339_s3 + $0x8] sm:$0xff] %v178_v41   ;;  %v78_v54 = vadd.f32 %v257_v4, %v58_v47  ;;  %v60_v55 = vmul.f32 %v252_v1, %v160_v48  ;;  %v61_v56 = vmul.f32 %v252_v1, %v161_v49  ;;  %v168_v57 = vunpack.c.l.bf16 %v216_v45 }
   0xe   :  { %218 = vst [vmem:[%s339_s3 + $0x10] sm:$0xff] %v183_v46   ;;  %v79_v58 = vadd.f32 %v257_v4, %v59_v51  ;;  %v62_v59 = vmul.f32 %v252_v1, %v164_v52  ;;  %v63_v60 = vmul.f32 %v252_v1, %v165_v53  ;;  %v169_v61 = vunpack.c.h.bf16 %v216_v45 }
   0xf   :  { %219 = vst [vmem:[%s339_s3 + $0x18] sm:$0xff] %v188_v50   ;;  %v94_v62 = vmax.f32 %v78_v54, 0.0  ;;  %v80_v63 = vadd.f32 %v257_v4, %v60_v55  ;;  %v81_v0 = vadd.f32 %v257_v4, %v61_v56  ;;  %v64_v2 = vmul.f32 %v252_v1, %v168_v57 }
  0x10   :  { %v95_v3 = vmax.f32 %v79_v58, 0.0  ;;  %v82_v5 = vadd.f32 %v257_v4, %v62_v59  ;;  %v83_v6 = vadd.f32 %v257_v4, %v63_v60  ;;  %v65_v7 = vmul.f32 %v252_v1, %v169_v61 }
  0x11   :  { %v96_v8 = vmax.f32 %v80_v63, 0.0  ;;  %v97_v9 = vmax.f32 %v81_v0, 0.0  ;;  %v84_v10 = vadd.f32 %v257_v4, %v64_v2 }
  0x12   :  { %v193_v11 = vpack.c.bf16 %v95_v3, %v94_v62  ;;  %v98_v12 = vmax.f32 %v82_v5, 0.0  ;;  %v99_v13 = vmax.f32 %v83_v6, 0.0  ;;  %v85_v14 = vadd.f32 %v257_v4, %v65_v7 }
  0x13   :  { %v198_v15 = vpack.c.bf16 %v97_v9, %v96_v8  ;;  %v100_v16 = vmax.f32 %v84_v10, 0.0 }
  0x14   :  { %220 = vst [vmem:[%s339_s3 + $0x20] sm:$0xff] %v193_v11   ;;  %v203_v17 = vpack.c.bf16 %v99_v13, %v98_v12  ;;  %v101_v18 = vmax.f32 %v85_v14, 0.0 }
  0x15   :  { %221 = vst [vmem:[%s339_s3 + $0x28] sm:$0xff] %v198_v15  }
  0x16   :  { %222 = vst [vmem:[%s339_s3 + $0x30] sm:$0xff] %v203_v17   ;;  %v208_v1 = vpack.c.bf16 %v101_v18, %v100_v16 }
  0x18   :  { %223 = vst [vmem:[%s339_s3 + $0x38] sm:$0xff] %v208_v1  }

// kernel: residual_block_forward.9
= control target key start
LH: loop header
LB: loop body
LE: loop exit
PB: predicated region body
PF: predicated region fallthrough
CT: control target
= control target key end

     0   :  { %s516_s0 = inlined_call_operand.vmem [shape: bf16[128,128], index: 0, kind: input, shape index: {}]   ;;  %s517_s1 = inlined_call_operand.vmem [shape: bf16[128,128], index: 1, kind: input, shape index: {}]   ;;  %s518_s2 = inlined_call_operand.vmem [shape: f32[1,128], index: 2, kind: input, shape index: {}]   ;;  %s519_s3 = inlined_call_operand.vmem [shape: f32[1,128], index: 3, kind: input, shape index: {}]   ;;  %s520_s4 = inlined_call_operand.vmem [shape: f32[1,128], index: 4, kind: input, shape index: {}]   ;;  %s521_s5 = inlined_call_operand.vmem [shape: f32[1,128], index: 5, kind: input, shape index: {}]   ;;  %s522_s6 = inlined_call_operand.vmem [shape: f32[128,128], index: 6, kind: output, shape index: {}]  }
   0x1   :  { %v220_v0 = vld [vmem:[%s516_s0] sm:$0xff]   ;;  %v283_v12 = vld [vmem:[%s516_s0 + $0x8] sm:$0xff]   ;;  %v284_v18 = vld [vmem:[%s516_s0 + $0x10] sm:$0xff]  }
   0x2   :  { %v342_v1 = vld [vmem:[%s518_s2] ss:$0 sm:$0xff]  ;;  %v221_v2 = vunpack.c.l.bf16 %v220_v0  ;;  %v222_v5 = vunpack.c.h.bf16 %v220_v0  ;;  %v290_v13 = vld [vmem:[%s517_s1 + $0x8] sm:$0xff]   ;;  %v225_v16 = vunpack.c.l.bf16 %v283_v12  ;;  %v291_v19 = vld [vmem:[%s517_s1 + $0x10] sm:$0xff]   ;;  %v226_v22 = vunpack.c.h.bf16 %v283_v12 }
   0x3   :  { %v347_v3 = vld [vmem:[%s519_s3] ss:$0 sm:$0xff]  ;;  %v257_v17 = vunpack.c.l.bf16 %v290_v13  ;;  %v258_v23 = vunpack.c.h.bf16 %v290_v13  ;;  %v229_v30 = vunpack.c.l.bf16 %v284_v18  ;;  %v261_v31 = vunpack.c.l.bf16 %v291_v19  ;;  %v285_v40 = vld [vmem:[%s516_s0 + $0x18] sm:$0xff]   ;;  %v287_v12 = vld [vmem:[%s516_s0 + $0x28] sm:$0xff]  }
   0x4   :  { %v252_v4 = vld [vmem:[%s517_s1] sm:$0xff]   ;;  %v59_v9 = vmul.f32 %v342_v1, %v221_v2  ;;  %v60_v11 = vmul.f32 %v342_v1, %v222_v5  ;;  %v61_v26 = vmul.f32 %v342_v1, %v225_v16  ;;  %v62_v28 = vmul.f32 %v342_v1, %v226_v22  ;;  %v292_v41 = vld [vmem:[%s517_s1 + $0x18] sm:$0xff]  }
   0x5   :  { %v253_v6 = vunpack.c.l.bf16 %v252_v4  ;;  %v355_v7 = vld [vmem:[%s520_s4] ss:$0 sm:$0xff]  ;;  %v254_v8 = vunpack.c.h.bf16 %v252_v4  ;;  %v63_v38 = vmul.f32 %v342_v1, %v229_v30  ;;  %v230_v45 = vunpack.c.h.bf16 %v284_v18  ;;  %v288_v30 = vld [vmem:[%s516_s0 + $0x30] sm:$0xff]  }
   0x6   :  { %v361_v10 = vld [vmem:[%s521_s5] ss:$0 sm:$0xff]  ;;  %v79_v20 = vadd.f32 %v347_v3, %v59_v9  ;;  %v80_v21 = vadd.f32 %v347_v3, %v60_v11  ;;  %v133_v27 = vmul.f32 %v355_v7, %v257_v17  ;;  %v134_v29 = vmul.f32 %v355_v7, %v258_v23 }
   0x7   :  { %v131_v14 = vmul.f32 %v355_v7, %v253_v6  ;;  %v132_v15 = vmul.f32 %v355_v7, %v254_v8  ;;  %v81_v34 = vadd.f32 %v347_v3, %v61_v26  ;;  %v82_v36 = vadd.f32 %v347_v3, %v62_v28  ;;  %v286_v54 = vld [vmem:[%s516_s0 + $0x20] sm:$0xff]  }
   0x8   :  { %v153_v35 = vadd.f32 %v361_v10, %v133_v27  ;;  %v154_v37 = vadd.f32 %v361_v10, %v134_v29  ;;  %v135_v39 = vmul.f32 %v355_v7, %v261_v31  ;;  %v83_v47 = vadd.f32 %v347_v3, %v63_v38  ;;  %v293_v59 = vld [vmem:[%s517_s1 + $0x20] sm:$0xff]  }
   0x9   :  { %v151_v24 = vadd.f32 %v361_v10, %v131_v14  ;;  %v152_v25 = vadd.f32 %v361_v10, %v132_v15  ;;  %v262_v49 = vunpack.c.h.bf16 %v291_v19  ;;  %v64_v51 = vmul.f32 %v342_v1, %v230_v45 }
   0xa   :  { %v169_v44 = vadd.f32 %v153_v35, %v81_v34  ;;  %v170_v46 = vadd.f32 %v154_v37, %v82_v36  ;;  %v155_v48 = vadd.f32 %v361_v10, %v135_v39  ;;  %v233_v52 = vunpack.c.l.bf16 %v285_v40  ;;  %v295_v35 = vld [vmem:[%s517_s1 + $0x30] sm:$0xff]  }
   0xb   :  { %v167_v32 = vadd.f32 %v151_v24, %v79_v20  ;;  %v168_v33 = vadd.f32 %v152_v25, %v80_v21  ;;  %v265_v53 = vunpack.c.l.bf16 %v292_v41  ;;  %v136_v57 = vmul.f32 %v355_v7, %v262_v49  ;;  %v294_v21 = vld [vmem:[%s517_s1 + $0x28] sm:$0xff]  }
   0xc   :  { %v185_v50 = vmax.f32 %v169_v44, 0.0  ;;  %v186_v55 = vmax.f32 %v170_v46, 0.0  ;;  %v171_v56 = vadd.f32 %v155_v48, %v83_v47  ;;  %v234_v58 = vunpack.c.h.bf16 %v285_v40  ;;  %v289_v48 = vld [vmem:[%s516_s0 + $0x38] sm:$0xff]  }
   0xd   :  { %v183_v42 = vmax.f32 %v167_v32, 0.0  ;;  %v184_v43 = vmax.f32 %v168_v33, 0.0  ;;  %v84_v60 = vadd.f32 %v347_v3, %v64_v51  ;;  %v65_v61 = vmul.f32 %v342_v1, %v233_v52 }
   0xe   :  { %201 = vst [vmem:[%s522_s6 + $0x10] sm:$0xff] %v185_v50  ;;  %v137_v62 = vmul.f32 %v355_v7, %v265_v53  ;;  %v266_v63 = vunpack.c.h.bf16 %v292_v41  ;;  %v187_v0 = vmax.f32 %v171_v56, 0.0  ;;  %v156_v2 = vadd.f32 %v361_v10, %v136_v57  ;;  %v296_v53 = vld [vmem:[%s517_s1 + $0x38] sm:$0xff]  }
   0xf   :  { %199 = vst [vmem:[%s522_s6] sm:$0xff] %v183_v42  ;;  %v66_v4 = vmul.f32 %v342_v1, %v234_v58  ;;  %v237_v5 = vunpack.c.l.bf16 %v286_v54  ;;  %v85_v6 = vadd.f32 %v347_v3, %v65_v61  ;;  %v269_v11 = vunpack.c.l.bf16 %v293_v59 }
  0x10   :  { %200 = vst [vmem:[%s522_s6 + $0x8] sm:$0xff] %v184_v43  ;;  %v157_v8 = vadd.f32 %v361_v10, %v137_v62  ;;  %v138_v9 = vmul.f32 %v355_v7, %v266_v63  ;;  %v172_v13 = vadd.f32 %v156_v2, %v84_v60  ;;  %v238_v16 = vunpack.c.h.bf16 %v286_v54 }
  0x11   :  { %202 = vst [vmem:[%s522_s6 + $0x18] sm:$0xff] %v186_v55  ;;  %v86_v14 = vadd.f32 %v347_v3, %v66_v4  ;;  %v67_v15 = vmul.f32 %v342_v1, %v237_v5  ;;  %v139_v19 = vmul.f32 %v355_v7, %v269_v11  ;;  %v270_v20 = vunpack.c.h.bf16 %v293_v59 }
  0x12   :  { %203 = vst [vmem:[%s522_s6 + $0x20] sm:$0xff] %v187_v0  ;;  %v173_v17 = vadd.f32 %v157_v8, %v85_v6  ;;  %v158_v18 = vadd.f32 %v361_v10, %v138_v9  ;;  %v188_v22 = vmax.f32 %v172_v13, 0.0  ;;  %v68_v24 = vmul.f32 %v342_v1, %v238_v16 }
  0x13   :  { %v87_v23 = vadd.f32 %v347_v3, %v67_v15  ;;  %v241_v25 = vunpack.c.l.bf16 %v287_v12  ;;  %v159_v28 = vadd.f32 %v361_v10, %v139_v19  ;;  %v140_v29 = vmul.f32 %v355_v7, %v270_v20 }
  0x14   :  { %v189_v26 = vmax.f32 %v173_v17, 0.0  ;;  %v174_v27 = vadd.f32 %v158_v18, %v86_v14  ;;  %204 = vst [vmem:[%s522_s6 + $0x28] sm:$0xff] %v188_v22  ;;  %v88_v31 = vadd.f32 %v347_v3, %v68_v24  ;;  %v273_v33 = vunpack.c.l.bf16 %v294_v21 }
  0x15   :  { %v69_v32 = vmul.f32 %v342_v1, %v241_v25  ;;  %v242_v34 = vunpack.c.h.bf16 %v287_v12  ;;  %v175_v37 = vadd.f32 %v159_v28, %v87_v23  ;;  %v160_v38 = vadd.f32 %v361_v10, %v140_v29 }
  0x16   :  { %205 = vst [vmem:[%s522_s6 + $0x30] sm:$0xff] %v189_v26  ;;  %v190_v36 = vmax.f32 %v174_v27, 0.0  ;;  %v274_v39 = vunpack.c.h.bf16 %v294_v21  ;;  %v141_v41 = vmul.f32 %v355_v7, %v273_v33  ;;  %v245_v43 = vunpack.c.l.bf16 %v288_v30 }
  0x17   :  { %v89_v40 = vadd.f32 %v347_v3, %v69_v32  ;;  %v70_v42 = vmul.f32 %v342_v1, %v242_v34  ;;  %v191_v44 = vmax.f32 %v175_v37, 0.0  ;;  %v176_v45 = vadd.f32 %v160_v38, %v88_v31 }
  0x18   :  { %206 = vst [vmem:[%s522_s6 + $0x38] sm:$0xff] %v190_v36  ;;  %v142_v46 = vmul.f32 %v355_v7, %v274_v39  ;;  %v277_v47 = vunpack.c.l.bf16 %v295_v35  ;;  %v161_v49 = vadd.f32 %v361_v10, %v141_v41  ;;  %v71_v51 = vmul.f32 %v342_v1, %v245_v43 }
  0x19   :  { %v90_v50 = vadd.f32 %v347_v3, %v70_v42  ;;  %v246_v52 = vunpack.c.h.bf16 %v288_v30  ;;  %207 = vst [vmem:[%s522_s6 + $0x40] sm:$0xff] %v191_v44  ;;  %v192_v54 = vmax.f32 %v176_v45, 0.0  ;;  %v278_v57 = vunpack.c.h.bf16 %v295_v35 }
  0x1a   :  { %v162_v55 = vadd.f32 %v361_v10, %v142_v46  ;;  %v143_v56 = vmul.f32 %v355_v7, %v277_v47  ;;  %v177_v58 = vadd.f32 %v161_v49, %v89_v40  ;;  %v91_v59 = vadd.f32 %v347_v3, %v71_v51 }
  0x1b   :  { %v72_v60 = vmul.f32 %v342_v1, %v246_v52  ;;  %v249_v61 = vunpack.c.l.bf16 %v289_v48  ;;  %208 = vst [vmem:[%s522_s6 + $0x48] sm:$0xff] %v192_v54  ;;  %v144_v0 = vmul.f32 %v355_v7, %v278_v57  ;;  %v281_v2 = vunpack.c.l.bf16 %v296_v53 }
  0x1c   :  { %v178_v62 = vadd.f32 %v162_v55, %v90_v50  ;;  %v163_v63 = vadd.f32 %v361_v10, %v143_v56  ;;  %v193_v4 = vmax.f32 %v177_v58, 0.0  ;;  %v250_v8 = vunpack.c.h.bf16 %v289_v48 }
  0x1d   :  { %v92_v5 = vadd.f32 %v347_v3, %v72_v60  ;;  %v73_v6 = vmul.f32 %v342_v1, %v249_v61  ;;  %v164_v12 = vadd.f32 %v361_v10, %v144_v0  ;;  %v145_v13 = vmul.f32 %v355_v7, %v281_v2 }
  0x1e   :  { %v194_v9 = vmax.f32 %v178_v62, 0.0  ;;  %v179_v11 = vadd.f32 %v163_v63, %v91_v59  ;;  %209 = vst [vmem:[%s522_s6 + $0x50] sm:$0xff] %v193_v4  ;;  %v74_v15 = vmul.f32 %v342_v1, %v250_v8  ;;  %v282_v16 = vunpack.c.h.bf16 %v296_v53 }
  0x1f   :  { %v93_v14 = vadd.f32 %v347_v3, %v73_v6  ;;  %v180_v18 = vadd.f32 %v164_v12, %v92_v5  ;;  %v165_v19 = vadd.f32 %v361_v10, %v145_v13 }
  0x20   :  { %210 = vst [vmem:[%s522_s6 + $0x58] sm:$0xff] %v194_v9  ;;  %v195_v17 = vmax.f32 %v179_v11, 0.0  ;;  %v94_v20 = vadd.f32 %v347_v3, %v74_v15  ;;  %v146_v21 = vmul.f32 %v355_v7, %v282_v16 }
  0x21   :  { %v196_v22 = vmax.f32 %v180_v18, 0.0  ;;  %v181_v23 = vadd.f32 %v165_v19, %v93_v14 }
  0x22   :  { %211 = vst [vmem:[%s522_s6 + $0x60] sm:$0xff] %v195_v17  ;;  %v166_v1 = vadd.f32 %v361_v10, %v146_v21 }
  0x23   :  { %212 = vst [vmem:[%s522_s6 + $0x68] sm:$0xff] %v196_v22  ;;  %v197_v24 = vmax.f32 %v181_v23, 0.0 }
  0x24   :  { %v182_v25 = vadd.f32 %v166_v1, %v94_v20 }
  0x25   :  { %213 = vst [vmem:[%s522_s6 + $0x70] sm:$0xff] %v197_v24 }
  0x26   :  { %v198_v3 = vmax.f32 %v182_v25, 0.0 }
  0x28   :  { %214 = vst [vmem:[%s522_s6 + $0x78] sm:$0xff] %v198_v3 }

// kernel: residual_block_forward.7
= control target key start
LH: loop header
LB: loop body
LE: loop exit
PB: predicated region body
PF: predicated region fallthrough
CT: control target
= control target key end

     0   :  { %s2332_s15 = smov 0   ;;  %s2334_s16 = smov 0   ;;  %s2917_s0 = inlined_call_operand.vmem [shape: bf16[2,10,10,128], index: 0, kind: input, shape index: {}]   ;;  %s2918_s1 = inlined_call_operand.vmem [shape: bf16[9,128,128], index: 1, kind: input, shape index: {}]   ;;  %s2919_s2 = inlined_call_operand.vmem [shape: bf16[128,128], index: 2, kind: output, shape index: {0}]   ;;  %s2920_s3 = inlined_call_operand.vmem [shape: f32[16,128], index: 3, kind: output, shape index: {1}]   ;;  %s2921_s4 = inlined_call_operand.vmem [shape: f32[16,128], index: 4, kind: output, shape index: {2}]  }
   0x1   :  { %s2336_s17 = smov 0  }
   0x2 LB: > { %s24_s18 = sadd.s32 1, %s2301_s16  ;;  %p1713_p0 = scmp.ge.s32.totalorder %s2305_s17, 1  ;;  %s2305_s17 = sphi %s2336_s17, %s15_s17   ;;  %s2301_s16 = sphi %s2334_s16, %s2927_s16   ;;  %s2297_s15 = sphi %s2332_s15, %s2926_s15  }
   0x3   : > { %p25_p1 = scmp.ge.s32.totalorder %s24_s18, 2  ;;  %p194_p2 = scmp.lt.s32.totalorder %s2305_s17, 3 }
   0x5   : > { %s2929_s18 = smov (%p25_p1, %s24_s18), 0  ;;  %p195_p3 = pnand %p1713_p0, %p194_p2 }
   0x6   : > { %p241_p4 = scmp.lt.s32.totalorder (!%p195_p3), %s2297_s15, 1 }
   0x7   : > { %198 = sbr.rel (%p195_p3) target bundleno = 347 (0x15b), region = 28 }
   0xc   : > { %v2162_v0 = vld [vmem:[%s2918_s1 + $0x78] sm:$0xff]  ;;  %v2161_v2 = vld [vmem:[%s2918_s1 + $0x70] sm:$0xff]  ;;  %s2363_s25 = scalar_select %p241_p4, %s2297_s15, 1  ;;  %v2160_v5 = vld [vmem:[%s2918_s1 + $0x68] sm:$0xff]  ;;  %vm309_vm0 = vsmask.f32 3328 }
   0xd   : > { %v2170_v1 = vld [vmem:[%s2918_s1 + $0xb8] sm:$0xff]  ;;  %2242 = vmatpush.bf16.msra.mxu1 %v2162_v0  ;;  %505 = vmatpush.bf16.msra.mxu0 %v2162_v0  ;;  %v2169_v3 = vld [vmem:[%s2918_s1 + $0xb0] sm:$0xff]  ;;  %v2168_v7 = vld [vmem:[%s2918_s1 + $0xa8] sm:$0xff]  ;;  %vm310_vm1 = vsmask.f32 7440  ;;  %vm643_vm2 = vcmask 1042432  }
   0xe   : > { %759 = vmatpush.bf16.msra.mxu2 %v2170_v1  ;;  %v2178_v4 = vld [vmem:[%s2918_s1 + $0xf8] sm:$0xff]  ;;  %s2258_s30 = smul.u32 80, %s2363_s25  ;;  %v2177_v6 = vld [vmem:[%s2918_s1 + $0xf0] sm:$0xff]  ;;  %v2159_v11 = vld [vmem:[%s2918_s1 + $0x60] sm:$0xff]  ;;  %vm644_vm3 = vcmask 1046532  }
   0xf   : > { %871 = vmatpush.bf16.msra.mxu3 %v2178_v4  ;;  %v2167_v17 = vld [vmem:[%s2918_s1 + $0xa0] sm:$0xff]  ;;  %v2176_v18 = vld [vmem:[%s2918_s1 + $0xe8] sm:$0xff]  ;;  %v2158_v39 = vld [vmem:[%s2918_s1 + $0x58] sm:$0xff] }
  0x10   : > { %s2384_s13 = scalar_lea.vmem %s2917_s0, %s2258_s30  ;;  %v2175_v35 = vld [vmem:[%s2918_s1 + $0xe0] sm:$0xff]  ;;  %v2166_v44 = vld [vmem:[%s2918_s1 + $0x98] sm:$0xff]  ;;  %vm2436_vm4 = vmor %vm309_vm0, %vm310_vm1  ;;  %s1717_s30 = sshll.u32 %s2363_s25, 3 }
  0x11   : > { %2243 = vmatpush.bf16.msra.mxu1 %v2161_v2  ;;  %506 = vmatpush.bf16.msra.mxu0 %v2161_v2  ;;  %v2387_v8 = vld [vmem:[%s2384_s13 + $0x20] sm:$0xf]  ;;  %v2390_v9 = vld [vmem:[%s2384_s13 + $0x24] sm:$0x1]  ;;  %v2393_v10 = vld [vmem:[%s2384_s13 + $0x28] sm:$0xf]  ;;  %s265_s7 = scalar_lea.vmem %s2920_s3, %s1717_s30  ;;  %s272_s10 = scalar_lea.vmem %s2921_s4, %s1717_s30 }
  0x12   : > { %760 = vmatpush.bf16.msra.mxu2 %v2169_v3  ;;  %v2399_v12 = vld [vmem:[%s2384_s13 + $0x2c] sm:$0x1]  ;;  %v369_v13 = vshrl.u32 %v2387_v8, 16  ;;  %v372_v14 = vshll.u32 %v2387_v8, 16  ;;  %v378_v15 = vshll.u32 %v2390_v9, 16  ;;  %v383_v16 = vshrl.u32 %v2393_v10, 16  ;;  %vm2442_vm5 = vmor %vm643_vm2, %vm644_vm3 }
  0x13   : > { %872 = vmatpush.bf16.msra.mxu3 %v2177_v6  ;;  %v386_v19 = vshll.u32 %v2393_v10, 16  ;;  %v2413_v20 = vld [vmem:[%s2384_s13] sm:$0xf]  ;;  %v392_v24 = vshll.u32 %v2399_v12, 16  ;;  %v274_v25 = vld [vmem:[%s2384_s13 + $0x4] sm:$0x1] }
  0x14   : > { %v371_v21 = vrot.slane %v369_v13, 4  ;;  %v374_v22 = vrot.slane %v372_v14, 5  ;;  %v385_v23 = vrot.slane %v383_v16, 4  ;;  %v380_v26 = vrot.slane %v378_v15, 5  ;;  %v2418_v28 = vld [vmem:[%s2384_s13 + $0x8] sm:$0xf] }
  0x15   : > { %2244 = vmatpush.bf16.msra.mxu1 %v2160_v5  ;;  %507 = vmatpush.bf16.msra.mxu0 %v2160_v5  ;;  %v388_v27 = vrot.slane %v386_v19, 5  ;;  %v276_v29 = vld [vmem:[%s2384_s13 + $0xc] sm:$0x1]  ;;  %v313_v31 = vshrl.u32 %v2413_v20, 16  ;;  %v316_v32 = vshll.u32 %v2413_v20, 16  ;;  %v322_v33 = vshll.u32 %v274_v25, 16 }
  0x16   : > { %761 = vmatpush.bf16.msra.mxu2 %v2168_v7  ;;  %v375_v30 = vor.u32 %v374_v22, %v371_v21  ;;  %v327_v36 = vshrl.u32 %v2418_v28, 16  ;;  %v330_v37 = vshll.u32 %v2418_v28, 16  ;;  %v336_v38 = vshll.u32 %v276_v29, 16  ;;  %v2174_v56 = vld [vmem:[%s2918_s1 + $0xd8] sm:$0xff]  ;;  %v2452_v58 = vld [vmem:[%s2384_s13 + $0x30] sm:$0xf] }
  0x17   : > { %873 = vmatpush.bf16.msra.mxu3 %v2176_v18  ;;  %v389_v34 = vor.u32 %v388_v27, %v385_v23  ;;  %v394_v41 = vrot.slane %v392_v24, 5  ;;  %v315_v42 = vrot.slane %v313_v31, 4  ;;  %v318_v43 = vrot.slane %v316_v32, 5  ;;  %v2157_v59 = vld [vmem:[%s2918_s1 + $0x50] sm:$0xff]  ;;  %v2467_v3 = vld [vmem:[%s2384_s13 + $0x38] sm:$0xf] }
  0x18   : > { %v376_v40 = vrot.slane %v375_v30, 4  ;;  %v329_v47 = vrot.slane %v327_v36, 4  ;;  %v332_v48 = vrot.slane %v330_v37, 5  ;;  %v324_v50 = vrot.slane %v322_v33, 5  ;;  %v2165_v0 = vld [vmem:[%s2918_s1 + $0x90] sm:$0xff]  ;;  %v2164_v18 = vld [vmem:[%s2918_s1 + $0x88] sm:$0xff] }
  0x19   : > { %2245 = vmatpush.bf16.msra.mxu1 %v2159_v11  ;;  %508 = vmatpush.bf16.msra.mxu0 %v2159_v11  ;;  %v390_v46 = vrot.slane %v389_v34, 4  ;;  %v319_v49 = vor.u32 %v318_v43, %v315_v42  ;;  %v1799_v52 = vrot.slane %v2413_v20, 9  ;;  %v648_v53 = vrot.slane %v274_v25, 5  ;;  %v2478_v11 = vld [vmem:[%s2384_s13 + $0x10] sm:$0xf]  ;;  %v2155_v34 = vld [vmem:[%s2918_s1 + $0x40] sm:$0xff] }
  0x1a   : > { %762 = vmatpush.bf16.msra.mxu2 %v2167_v17  ;;  %v333_v54 = vor.u32 %v332_v48, %v329_v47  ;;  %v338_v55 = vrot.slane %v336_v38, 5  ;;  %v1800_v57 = vrot.slane %v2418_v28, 9  ;;  %v381_v60 = vsel %vm2436_vm4, %v376_v40, %v380_v26  ;;  %v2173_v16 = vld [vmem:[%s2918_s1 + $0xd0] sm:$0xff]  ;;  %v2156_v17 = vld [vmem:[%s2918_s1 + $0x48] sm:$0xff]  ;;  %v2506_v27 = vld [vmem:[%s2384_s13 + $0x18] sm:$0xf] }
  0x1b   : > { %874 = vmatpush.bf16.msra.mxu3 %v2175_v35  ;;  %v395_v61 = vsel %vm2436_vm4, %v390_v46, %v394_v41  ;;  %v320_v62 = vrot.slane %v319_v49, 4  ;;  %v652_v63 = vrot.slane %v276_v29, 5  ;;  %v649_v2 = vsel %vm2442_vm5, %v1799_v52, %v648_v53  ;;  %v2502_v25 = vld [vmem:[%s2384_s13 + $0x34] sm:$0x1]  ;;  %v2510_v30 = vld [vmem:[%s2384_s13 + $0x3c] sm:$0x1] }
  0x1c   : > { %v334_v1 = vrot.slane %v333_v54, 4  ;;  %v397_v6 = vshrl.u32 %v2452_v58, 16  ;;  %v400_v7 = vshll.u32 %v2452_v58, 16  ;;  %v2480_v13 = vunpack.c.l.b16 %v381_v60  ;;  %v2172_v36 = vld [vmem:[%s2918_s1 + $0xc8] sm:$0xff]  ;;  %v2525_v40 = vld [vmem:[%s2384_s13 + $0x1c] sm:$0x1] }
  0x1d   : > { %2246 = vmatpush.bf16.msra.mxu1 %v2158_v39  ;;  %509 = vmatpush.bf16.msra.mxu0 %v2158_v39  ;;  %v325_v4 = vsel %vm2436_vm4, %v320_v62, %v324_v50  ;;  %v2473_v5 = vsel %vm2442_vm5, %v1800_v57, %v652_v63  ;;  %v2482_v14 = vunpack.c.l.b16 %v395_v61  ;;  %v695_v21 = vunpack.c.l.b16 %v649_v2  ;;  %v278_v39 = vld [vmem:[%s2384_s13 + $0x14] sm:$0x1]  ;;  %v2154_v46 = vld [vmem:[%s2918_s1 + $0x38] sm:$0xff]  ;;  %v2163_v47 = vld [vmem:[%s2918_s1 + $0x80] sm:$0xff] }
  0x1e   : > { %763 = vmatpush.bf16.msra.mxu2 %v2166_v44  ;;  %v339_v15 = vsel %vm2436_vm4, %v334_v1, %v338_v55  ;;  %v2495_v19 = vunpack.c.l.b16 %v325_v4  ;;  %v411_v22 = vshrl.u32 %v2467_v3, 16  ;;  %v696_v24 = vunpack.c.l.b16 %v2473_v5  ;;  %v2186_v53 = vld [vmem:[%s2918_s1 + $0x138] sm:$0xff] }
  0x1f   : > { %875 = vmatpush.bf16.msra.mxu3 %v2174_v56  ;;  %v2498_v23 = vunpack.c.l.b16 %v339_v15  ;;  %v414_v26 = vshll.u32 %v2467_v3, 16  ;;  %v341_v29 = vshrl.u32 %v2478_v11, 16  ;;  %v399_v31 = vrot.slane %v397_v6, 4  ;;  %v2202_v55 = vld [vmem:[%s2918_s1 + $0x1b8] sm:$0xff] }
  0x20   : > { %v402_v32 = vrot.slane %v400_v7, 5  ;;  %v344_v33 = vshll.u32 %v2478_v11, 16  ;;  %v2518_v35 = vpack.c.b16 %v2482_v14, %v2480_v13  ;;  %v413_v37 = vrot.slane %v411_v22, 4  ;;  %v2153_v7 = vld [vmem:[%s2918_s1 + $0x30] sm:$0xff]  ;;  %v2210_v15 = vld [vmem:[%s2918_s1 + $0x1f8] sm:$0xff] }
  0x21   : > { %2247 = vmatpush.bf16.msra.mxu1 %v2157_v59  ;;  %510 = vmatpush.bf16.msra.mxu0 %v2157_v59  ;;  %v416_v38 = vrot.slane %v414_v26, 5  ;;  %v343_v41 = vrot.slane %v341_v29, 4  ;;  %v355_v43 = vshrl.u32 %v2506_v27, 16  ;;  %v358_v44 = vshll.u32 %v2506_v27, 16 }
  0x22   : > { %764 = vmatpush.bf16.msra.mxu2 %v2165_v0  ;;  %v346_v42 = vrot.slane %v344_v33, 5  ;;  %v449_v48 = vpack.c.b16 %v2498_v23, %v2495_v19  ;;  %v703_v49 = vpack.c.b16 %v696_v24, %v695_v21  ;;  %v406_v50 = vshll.u32 %v2502_v25, 16  ;;  %v2171_v0 = vld [vmem:[%s2918_s1 + $0xc0] sm:$0xff]  ;;  %v2201_v21 = vld [vmem:[%s2918_s1 + $0x1b0] sm:$0xff] }
  0x23   : > { %876 = vmatpush.bf16.msra.mxu3 %v2173_v16  ;;  %v420_v52 = vshll.u32 %v2510_v30, 16  ;;  %v403_v54 = vor.u32 %v402_v32, %v399_v31  ;;  %v350_v56 = vshll.u32 %v278_v39, 16  ;;  %v357_v57 = vrot.slane %v355_v43, 4  ;;  %v2185_v16 = vld [vmem:[%s2918_s1 + $0x130] sm:$0xff]  ;;  %v2184_v43 = vld [vmem:[%s2918_s1 + $0x128] sm:$0xff] }
  0x24   : > { %v360_v59 = vrot.slane %v358_v44, 5  ;;  %v417_v60 = vor.u32 %v416_v38, %v413_v37  ;;  %v364_v61 = vshll.u32 %v2525_v40, 16  ;;  %v543_v62 = vunpack.c.l.b16 %v2418_v28  ;;  %v2152_v37 = vld [vmem:[%s2918_s1 + $0x28] sm:$0xff] }
  0x25   : > { %2248 = vmatpush.bf16.msra.mxu1 %v2156_v17  ;;  %511 = vmatpush.bf16.msra.mxu0 %v2156_v17  ;;  %v544_v63 = vunpack.c.l.b16 %v2478_v11  ;;  %v347_v1 = vor.u32 %v346_v42, %v343_v41  ;;  %v1801_v4 = vrot.slane %v2478_v11, 9  ;;  %v656_v6 = vrot.slane %v278_v39, 5  ;;  %v2209_v42 = vld [vmem:[%s2918_s1 + $0x1f0] sm:$0xff]  ;;  %v2200_v44 = vld [vmem:[%s2918_s1 + $0x1a8] sm:$0xff] }
  0x26   : > { %765 = vmatpush.bf16.msra.mxu2 %v2164_v18  ;;  %v361_v2 = vor.u32 %v360_v59, %v357_v57  ;;  %v408_v17 = vrot.slane %v406_v50, 5  ;;  %v422_v18 = vrot.slane %v420_v52, 5  ;;  %v404_v22 = vrot.slane %v403_v54, 4  ;;  %v2183_v50 = vld [vmem:[%s2918_s1 + $0x120] sm:$0xff]  ;;  %v2150_v59 = vld [vmem:[%s2918_s1 + $0x18] sm:$0xff]  ;;  %v2192_v28 = vld [vmem:[%s2918_s1 + $0x168] sm:$0xff] }
  0x27   : > { %877 = vmatpush.bf16.msra.mxu3 %v2172_v36  ;;  %v657_v19 = vsel %vm2442_vm5, %v1801_v4, %v656_v6  ;;  %v352_v26 = vrot.slane %v350_v56, 5  ;;  %v815_v29 = vpack.c.b16 %v544_v63, %v543_v62  ;;  %v418_v32 = vrot.slane %v417_v60, 4  ;;  %v2199_v52 = vld [vmem:[%s2918_s1 + $0x1a0] sm:$0xff]  ;;  %v2182_v60 = vld [vmem:[%s2918_s1 + $0x118] sm:$0xff]  ;;  %v2149_v6 = vld [vmem:[%s2918_s1 + $0x10] sm:$0xff] }
  0x28   : > { %v697_v31 = vunpack.c.l.b16 %v657_v19  ;;  %v348_v33 = vrot.slane %v347_v1, 4  ;;  %v366_v36 = vrot.slane %v364_v61, 5  ;;  %v1802_v38 = vrot.slane %v2506_v27, 9 }
  0x29   : > { %2249 = vmatpush.bf16.msra.mxu1 %v2155_v34  ;;  %512 = vmatpush.bf16.msra.mxu0 %v2155_v34  ;;  %v362_v34 = vrot.slane %v361_v2, 4  ;;  %v660_v39 = vrot.slane %v2525_v40, 5  ;;  %v409_v5 = vsel %vm2436_vm4, %v404_v22, %v408_v17  ;;  %v545_v1 = vunpack.c.l.b16 %v2506_v27  ;;  %v2207_v17 = vld [vmem:[%s2918_s1 + $0x1e0] sm:$0xff] }
  0x2a   : > { %766 = vmatpush.bf16.msra.mxu2 %v2163_v47  ;;  %v2580_v41 = vpack.c.b16 %v697_v31, %v696_v24  ;;  %v423_v24 = vsel %vm2436_vm4, %v418_v32, %v422_v18  ;;  %v353_v40 = vsel %vm2436_vm4, %v348_v33, %v352_v26  ;;  %v2151_v47 = vld [vmem:[%s2918_s1 + $0x20] sm:$0xff]  ;;  %v546_v2 = vunpack.c.l.b16 %v2387_v8  ;;  %v2148_v18 = vld [vmem:[%s2918_s1 + $0x8] sm:$0xff]  ;;  %v2206_v32 = vld [vmem:[%s2918_s1 + $0x1d8] sm:$0xff] }
  0x2b   : > { %878 = vmatpush.bf16.msra.mxu3 %v2171_v0  ;;  %v2617_v54 = vunpack.c.l.b16 %v423_v24  ;;  %v1803_v19 = vrot.slane %v2387_v8, 9  ;;  %v1804_v22 = vrot.slane %v2393_v10, 9  ;;  %v668_v26 = vrot.slane %v2399_v12, 5  ;;  %v2203_v27 = vld [vmem:[%s2918_s1 + $0x1c0] sm:$0xff] }
  0x2c   : > { %523 = vmatmul.bf16.vlgmr.msra.gmra.mxu1 %v2518_v35  ;;  %513 = vmatmul.bf16.vlgmr.msra.gmra.mxu0 %v449_v48  ;;  %v2604_v48 = vsel %vm2442_vm5, %v1802_v38, %v660_v39  ;;  %v2218_v38 = vld [vmem:[%s2918_s1 + $0x238] sm:$0xff]  ;;  %v548_v24 = vunpack.c.l.b16 %v2452_v58 }
  0x2d   : > { %606 = vmatpush.bf16.msrb.mxu1 %v2154_v46  ;;  %996 = vmatpush.bf16.msrb.mxu0 %v2186_v53  ;;  %v367_v46 = vsel %vm2436_vm4, %v362_v34, %v366_v36  ;;  %v2615_v53 = vunpack.c.l.b16 %v409_v5  ;;  %v698_v57 = vunpack.c.l.b16 %v2604_v48  ;;  %v2688_v33 = vsel %vm2442_vm5, %v1804_v22, %v668_v26  ;;  %v2194_v34 = vld [vmem:[%s2918_s1 + $0x178] sm:$0xff]  ;;  %v2179_v36 = vld [vmem:[%s2918_s1 + $0x100] sm:$0xff]  ;;  %v291_v48 = vld [vmem:[%s2384_s13 + $0x48] sm:$0xf] }
  0x2e   : > { %1218 = vmatpush.bf16.msrb.mxu2 %v2202_v55  ;;  %879 = vmatmul.bf16.vlgmr.msra.gmra.mxu3 %v815_v29  ;;  %v2619_v55 = vunpack.c.l.b16 %v353_v40  ;;  %v2621_v56 = vunpack.c.l.b16 %v367_v46  ;;  %v2197_v29 = vld [vmem:[%s2918_s1 + $0x190] sm:$0xff]  ;;  %v547_v5 = vunpack.c.l.b16 %v2393_v10  ;;  %v551_v22 = vpack.c.b16 %v545_v1, %v544_v63 }
  0x2f   : > { %767 = vmatmul.bf16.vlgmr.msra.gmra.mxu2 %v703_v49  ;;  %1337 = vmatpush.bf16.msrb.mxu3 %v2210_v15  ;;  %v2208_v49 = vld [vmem:[%s2918_s1 + $0x1e8] sm:$0xff]  ;;  %v2632_v61 = vpack.c.b16 %v2617_v54, %v2615_v53  ;;  %v2642_v4 = vpack.c.b16 %v698_v57, %v697_v31  ;;  %v816_v15 = vpack.c.b16 %v546_v2, %v545_v1  ;;  %v2217_v46 = vld [vmem:[%s2918_s1 + $0x230] sm:$0xff] }
  0x30   : > { %v2636_v0 = vpack.c.b16 %v2621_v56, %v2619_v55  ;;  %v2180_v31 = vld [vmem:[%s2918_s1 + $0x108] sm:$0xff]  ;;  %v941_v26 = vpack.c.b16 %v2480_v13, %v2621_v56  ;;  %v2213_v63 = vld [vmem:[%s2918_s1 + $0x210] sm:$0xff]  ;;  %v2187_v56 = vld [vmem:[%s2918_s1 + $0x140] sm:$0xff] }
  0x31   : > { %607 = vmatpush.bf16.msrb.mxu1 %v2153_v7  ;;  %997 = vmatpush.bf16.msrb.mxu0 %v2185_v16  ;;  %v2181_v7 = vld [vmem:[%s2918_s1 + $0x110] sm:$0xff]  ;;  %v2198_v16 = vld [vmem:[%s2918_s1 + $0x198] sm:$0xff]  ;;  %v2188_v13 = vld [vmem:[%s2918_s1 + $0x148] sm:$0xff] }
  0x32   : > { %1219 = vmatpush.bf16.msrb.mxu2 %v2201_v21  ;;  %v664_v21 = vrot.slane %v2390_v9, 5  ;;  %v2147_v9 = vld [vmem:[%s2918_s1] sm:$0xff] }
  0x33   : > { %1338 = vmatpush.bf16.msrb.mxu3 %v2209_v42  ;;  %v700_v42 = vunpack.c.l.b16 %v2688_v33 }
  0x34   : > { %v2684_v12 = vsel %vm2442_vm5, %v1803_v19, %v664_v21  ;;  %v2767_v19 = vld [vmem:[%s2384_s13 + $0x40] sm:$0xf]  ;;  %v2189_v21 = vld [vmem:[%s2918_s1 + $0x150] sm:$0xff] }
  0x35   : > { %608 = vmatpush.bf16.msrb.mxu1 %v2152_v37  ;;  %998 = vmatpush.bf16.msrb.mxu0 %v2184_v43  ;;  %v542_v37 = vunpack.c.l.b16 %v2413_v20  ;;  %v699_v39 = vunpack.c.l.b16 %v2684_v12  ;;  %v2193_v43 = vld [vmem:[%s2918_s1 + $0x170] sm:$0xff]  ;;  %v940_v20 = vpack.c.b16 %v2619_v55, %v2498_v23  ;;  %v2196_v23 = vld [vmem:[%s2918_s1 + $0x188] sm:$0xff]  ;;  %v1806_v55 = vrot.slane %v2467_v3, 9 }
  0x36   : > { %1220 = vmatpush.bf16.msrb.mxu2 %v2200_v44  ;;  %v909_v1 = vshrl.u32 %v2767_v19, 16  ;;  %v1259_v12 = vshll.u32 %v291_v48, 16 }
  0x37   : > { %1339 = vmatpush.bf16.msrb.mxu3 %v2208_v49  ;;  %v550_v44 = vpack.c.b16 %v543_v62, %v542_v37  ;;  %v2715_v40 = vpack.c.b16 %v700_v42, %v699_v39  ;;  %v817_v62 = vpack.c.b16 %v548_v24, %v547_v5  ;;  %v2205_v49 = vld [vmem:[%s2918_s1 + $0x1d0] sm:$0xff]  ;;  %v1057_v8 = vpack.c.b16 %v699_v39, %v698_v57 }
  0x38   : > { %v1256_v57 = vshrl.u32 %v291_v48, 16 }
  0x39   : > { %609 = vmatpush.bf16.msrb.mxu1 %v2151_v47  ;;  %999 = vmatpush.bf16.msrb.mxu0 %v2183_v50  ;;  %v2216_v47 = vld [vmem:[%s2918_s1 + $0x228] sm:$0xff]  ;;  %v1805_v50 = vrot.slane %v2452_v58, 9 }
  0x3a   : > { %1221 = vmatpush.bf16.msrb.mxu2 %v2199_v52  ;;  %v672_v52 = vrot.slane %v2502_v25, 5  ;;  %v2204_v25 = vld [vmem:[%s2918_s1 + $0x1c8] sm:$0xff]  ;;  %v1258_v39 = vrot.slane %v1256_v57, 4 }
  0x3b   : > { %1340 = vmatpush.bf16.msrb.mxu3 %v2207_v17 }
  0x3c   : > { %528 = vmatmul.bf16.gmra.mxu1 %v2632_v61  ;;  %518 = vmatmul.bf16.gmra.mxu0 %v2636_v0 }
  0x3d   : > { %610 = vmatpush.bf16.msrb.mxu1 %v2150_v59  ;;  %1000 = vmatpush.bf16.msrb.mxu0 %v2182_v60  ;;  %v676_v59 = vrot.slane %v2510_v30, 5  ;;  %v2195_v60 = vld [vmem:[%s2918_s1 + $0x180] sm:$0xff] }
  0x3e   : > { %1222 = vmatpush.bf16.msrb.mxu2 %v2198_v16  ;;  %884 = vmatmul.bf16.gmra.mxu3 %v816_v15  ;;  %v2215_v30 = vld [vmem:[%s2918_s1 + $0x220] sm:$0xff]  ;;  %v2190_v16 = vld [vmem:[%s2918_s1 + $0x158] sm:$0xff] }
  0x3f   : > { %772 = vmatmul.bf16.gmra.mxu2 %v2642_v4  ;;  %1341 = vmatpush.bf16.msrb.mxu3 %v2206_v32  ;;  %v2759_v15 = vsel %vm2442_vm5, %v1806_v55, %v676_v59  ;;  %v2096_v59 = vrot.slane %v291_v48, 9 }
  0x41   : > { %611 = vmatpush.bf16.msrb.mxu1 %v2149_v6  ;;  %1001 = vmatpush.bf16.msrb.mxu0 %v2181_v7  ;;  %v2191_v6 = vld [vmem:[%s2918_s1 + $0x160] sm:$0xff]  ;;  %v2755_v7 = vsel %vm2442_vm5, %v1805_v50, %v672_v52 }
  0x42   : > { %1223 = vmatpush.bf16.msrb.mxu2 %v2197_v29  ;;  %v701_v17 = vunpack.c.l.b16 %v2755_v7  ;;  %v549_v29 = vunpack.c.l.b16 %v2467_v3  ;;  %v2214_v3 = vld [vmem:[%s2918_s1 + $0x218] sm:$0xff] }
  0x43   : > { %1342 = vmatpush.bf16.msrb.mxu3 %v2205_v49  ;;  %v1167_v49 = vunpack.c.l.b16 %v291_v48 }
  0x45   : > { %612 = vmatpush.bf16.msrb.mxu1 %v2148_v18  ;;  %1002 = vmatpush.bf16.msrb.mxu0 %v2180_v31  ;;  %v702_v18 = vunpack.c.l.b16 %v2759_v15  ;;  %v814_v31 = vunpack.c.l.b16 %v2767_v19 }
  0x46   : > { %1224 = vmatpush.bf16.msrb.mxu2 %v2196_v23 }
  0x47   : > { %1343 = vmatpush.bf16.msrb.mxu3 %v2204_v25  ;;  %v2784_v32 = vpack.c.b16 %v702_v18, %v701_v17  ;;  %v818_v11 = vpack.c.b16 %v814_v31, %v549_v29  ;;  %v1168_v52 = vpack.c.b16 %v1167_v49, %v814_v31 }
  0x49   : > { %613 = vmatpush.bf16.msrb.mxu1 %v2147_v9  ;;  %1003 = vmatpush.bf16.msrb.mxu0 %v2179_v36  ;;  %v912_v9 = vshll.u32 %v2767_v19, 16  ;;  %v911_v36 = vrot.slane %v909_v1, 4 }
  0x4a   : > { %1225 = vmatpush.bf16.msrb.mxu2 %v2195_v60 }
  0x4b   : > { %1344 = vmatpush.bf16.msrb.mxu3 %v2203_v27  ;;  %v914_v37 = vrot.slane %v912_v9, 5 }
  0x4c   : > { %614 = vmatmul.bf16.vlgmr.msrb.gmra.mxu1 %v550_v44  ;;  %1004 = vmatmul.bf16.vlgmr.msrb.gmra.mxu0 %v940_v20  ;;  %v942_v44 = vpack.c.b16 %v2615_v53, %v2482_v14  ;;  %v553_v53 = vpack.c.b16 %v549_v29, %v548_v24 }
  0x4d   : > { %1112 = vmatpush.bf16.msra.mxu1 %v2194_v34  ;;  %1447 = vmatpush.bf16.msra.mxu0 %v2218_v38  ;;  %v2212_v34 = vld [vmem:[%s2918_s1 + $0x208] sm:$0xff]  ;;  %v915_v20 = vor.u32 %v914_v37, %v911_v36 }
  0x4e   : > { %889 = vmatmul.bf16.gmra.mxu3 %v817_v62  ;;  %2250 = vmatpush.bf16.msra.mxu2 %v2218_v38  ;;  %v290_v38 = vld [vmem:[%s2384_s13 + $0x44] sm:$0x1] }
  0x4f   : > { %777 = vmatmul.bf16.gmra.mxu2 %v2715_v40  ;;  %v916_v23 = vrot.slane %v915_v20, 4  ;;  %v1036_v55 = vrot.slane %v290_v38, 5 }
  0x51   : > { %1113 = vmatpush.bf16.msra.mxu1 %v2193_v43  ;;  %1448 = vmatpush.bf16.msra.mxu0 %v2217_v46  ;;  %v552_v43 = vpack.c.b16 %v547_v5, %v546_v2  ;;  %v292_v5 = vld [vmem:[%s2384_s13 + $0x4c] sm:$0x1]  ;;  %s1715_s13 = sshll.u32 %s2297_s15, 3 }
  0x52   : > { %2251 = vmatpush.bf16.msra.mxu2 %v2217_v46  ;;  %v918_v46 = vshll.u32 %v290_v38, 16  ;;  %v1265_v24 = vshll.u32 %v292_v5, 16  ;;  %p251_p5 = scmp.lt.s32.totalorder %s1715_s13, 15 }
  0x54   : > { %v920_v62 = vrot.slane %v918_v46, 5  ;;  %s2931_s13 = smov (!%p251_p5, %s1715_s13), 15 }
  0x55   : > { %1114 = vmatpush.bf16.msra.mxu1 %v2192_v28  ;;  %1449 = vmatpush.bf16.msra.mxu0 %v2216_v47  ;;  %v2211_v28 = vld [vmem:[%s2918_s1 + $0x200] sm:$0xff]  ;;  %s1716_s27 = sshll.u32 %s2931_s13, 2 }
  0x56   : > { %2252 = vmatpush.bf16.msra.mxu2 %v2216_v47  ;;  %v921_v10 = vsel %vm2436_vm4, %v916_v23, %v920_v62  ;;  %v1267_v47 = vrot.slane %v1265_v24, 5  ;;  %s2883_s29 = scalar_lea.vmem %s2919_s2, %s1716_s27 }
  0x57   : > { %v939_v14 = vunpack.c.l.b16 %v921_v10 }
  0x59   : > { %1115 = vmatpush.bf16.msra.mxu1 %v2191_v6  ;;  %1450 = vmatpush.bf16.msra.mxu0 %v2215_v30  ;;  %v943_v2 = vpack.c.b16 %v939_v14, %v2617_v54 }
  0x5a   : > { %2253 = vmatpush.bf16.msra.mxu2 %v2215_v30 }
  0x5c   : > { %619 = vmatmul.bf16.gmra.mxu1 %v551_v22  ;;  %1009 = vmatmul.bf16.gmra.mxu0 %v941_v26 }
  0x5d   : > { %1116 = vmatpush.bf16.msra.mxu1 %v2190_v16  ;;  %1451 = vmatpush.bf16.msra.mxu0 %v2214_v3 }
  0x5e   : > { %894 = vmatmul.bf16.gmra.mxu3 %v818_v11  ;;  %2254 = vmatpush.bf16.msra.mxu2 %v2214_v3 }
  0x5f   : > { %782 = vmatmul.bf16.gmra.mxu2 %v2784_v32 }
  0x61   : > { %1117 = vmatpush.bf16.msra.mxu1 %v2189_v21  ;;  %1452 = vmatpush.bf16.msra.mxu0 %v2213_v63 }
  0x62   : > { %2255 = vmatpush.bf16.msra.mxu2 %v2213_v63 }
  0x65   : > { %1118 = vmatpush.bf16.msra.mxu1 %v2188_v13  ;;  %1453 = vmatpush.bf16.msra.mxu0 %v2212_v34 }
  0x66   : > { %2256 = vmatpush.bf16.msra.mxu2 %v2212_v34 }
  0x69   : > { %1119 = vmatpush.bf16.msra.mxu1 %v2187_v56  ;;  %1454 = vmatpush.bf16.msra.mxu0 %v2211_v28 }
  0x6a   : > { %2257 = vmatpush.bf16.msra.mxu2 %v2211_v28 }
  0x6c   : > { %624 = vmatmul.bf16.gmra.mxu1 %v552_v43  ;;  %1014 = vmatmul.bf16.gmra.mxu0 %v942_v44 }
  0x6e   : > { %1345 = vmatmul.bf16.vlgmr.msrb.gmra.mxu3 %v2636_v0  ;;  %v1261_v0 = vrot.slane %v1259_v12, 5 }
  0x6f   : > { %1226 = vmatmul.bf16.vlgmr.msrb.gmra.mxu2 %v551_v22 }
  0x70   : > { %v1262_v58 = vor.u32 %v1261_v0, %v1258_v39 }
  0x72   : > { %v1263_v54 = vrot.slane %v1262_v58, 4 }
  0x7c   : > { %629 = vmatmul.bf16.gmra.mxu1 %v553_v53  ;;  %1019 = vmatmul.bf16.gmra.mxu0 %v943_v2 }
  0x7e   : > { %1350 = vmatmul.bf16.gmra.mxu3 %v2518_v35  ;;  %v1268_v35 = vsel %vm2436_vm4, %v1263_v54, %v1267_v47 }
  0x7f   : > { %1231 = vmatmul.bf16.gmra.mxu2 %v552_v43  ;;  %v1286_v50 = vunpack.c.l.b16 %v1268_v35 }
  0x8c   : > { %1120 = vmatmul.bf16.vlgmr.msra.gmra.mxu1 %v2580_v41  ;;  %1455 = vmatmul.bf16.vlgmr.msra.gmra.mxu0 %v2642_v4  ;;  %v1287_v41 = vpack.c.b16 %v1286_v50, %v939_v14  ;;  %v1951_v4 = vrot.slane %v2767_v19, 9 }
  0x8e   : > { %1355 = vmatmul.bf16.gmra.mxu3 %v2632_v61  ;;  %v1377_v61 = vrot.slane %v292_v5, 5  ;;  %v1037_v60 = vsel %vm2442_vm5, %v1951_v4, %v1036_v55 }
  0x8f   : > { %1236 = vmatmul.bf16.gmra.mxu2 %v553_v53  ;;  %v1055_v6 = vunpack.c.l.b16 %v1037_v60 }
  0x90   : > { %v1378_v45 = vsel %vm2442_vm5, %v2096_v59, %v1377_v61 }
  0x91   : > { %v1396_v25 = vunpack.c.l.b16 %v1378_v45  ;;  %v1059_v51 = vpack.c.b16 %v1055_v6, %v702_v18 }
  0x93   : > { %v1397_v19 = vpack.c.b16 %v1396_v25, %v1055_v6 }
  0x9c   : > { %1125 = vmatmul.bf16.gmra.mxu1 %v1057_v8  ;;  %1460 = vmatmul.bf16.gmra.mxu0 %v2715_v40  ;;  %v1058_v40 = vpack.c.b16 %v701_v17, %v700_v42 }
  0x9e   : > { %1360 = vmatmul.bf16.gmra.mxu3 %v1287_v41 }
  0x9f   : > { %1241 = vmatmul.bf16.gmra.mxu2 %v1168_v52 }
  0xa9   : > { %v524_v30 = vpop.f32.mrf.mxu1  ;;  %v514_v16 = vpop.f32.mrf.mxu0 }
  0xac   : > { %1130 = vmatmul.bf16.gmra.mxu1 %v1058_v40  ;;  %1465 = vmatmul.bf16.gmra.mxu0 %v2784_v32 }
  0xaf   : > { %1470 = vmatmul.bf16.vlgmr.msra.gmra.mxu2 %v1397_v19 }
  0xb1   : > { %v526_v22 = vpop.f32.mrf.mxu1  ;;  %v516_v26 = vpop.f32.mrf.mxu0 }
  0xb2   : > { %v768_v21 = vpop.f32.mrf.mxu2  ;;  %v880_v29 = vpop.f32.mrf.mxu3 }
  0xb9   : > { %v529_v11 = vpop.f32.mrf.mxu1  ;;  %v519_v33 = vpop.f32.mrf.mxu0 }
  0xba   : > { %v770_v31 = vpop.f32.mrf.mxu2  ;;  %v2852_v13 = vpop.f32.mrf.mxu3 }
  0xbc   : > { %1135 = vmatmul.bf16.gmra.mxu1 %v1059_v51 }
  0xc1   : > { %v531_v7 = vpop.f32.mrf.mxu1  ;;  %v521_v17 = vpop.f32.mrf.mxu0 }
  0xc2   : > { %v773_v42 = vpop.f32.mrf.mxu2  ;;  %v885_v3 = vpop.f32.mrf.mxu3 }
  0xc9   : > { %v615_v32 = vpop.f32.mrf.mxu1  ;;  %v1005_v63 = vpop.f32.mrf.mxu0 }
  0xca   : > { %v775_v27 = vpop.f32.mrf.mxu2  ;;  %v616_v56 = vadd.f32 %v615_v32, %v514_v16  ;;  %v2854_v9 = vpop.f32.mrf.mxu3 }
  0xcc   : > { %v788_v1 = vadd.f32 %v768_v21, %v616_v56 }
  0xce   : > { %v900_v34 = vadd.f32 %v880_v29, %v788_v1 }
  0xd0   : > { %v1025_v15 = vadd.f32 %v1005_v63, %v900_v34 }
  0xd1   : > { %v617_v36 = vpop.f32.mrf.mxu1  ;;  %v1007_v37 = vpop.f32.mrf.mxu0 }
  0xd2   : > { %v778_v18 = vpop.f32.mrf.mxu2  ;;  %v618_v38 = vadd.f32 %v617_v36, %v516_v26  ;;  %v890_v44 = vpop.f32.mrf.mxu3 }
  0xd4   : > { %v789_v43 = vadd.f32 %v770_v31, %v618_v38 }
  0xd9   : > { %v620_v46 = vpop.f32.mrf.mxu1  ;;  %v1010_v28 = vpop.f32.mrf.mxu0 }
  0xda   : > { %v780_v20 = vpop.f32.mrf.mxu2  ;;  %v621_v23 = vadd.f32 %v620_v46, %v519_v33  ;;  %v2856_v53 = vpop.f32.mrf.mxu3  ;;  %v901_v33 = vadd.f32 %v2852_v13, %v789_v43 }
  0xdc   : > { %v790_v62 = vadd.f32 %v773_v42, %v621_v23 }
  0xde   : > { %v902_v8 = vadd.f32 %v885_v3, %v790_v62 }
  0xe0   : > { %v1027_v10 = vadd.f32 %v1010_v28, %v902_v8 }
  0xe1   : > { %v622_v2 = vpop.f32.mrf.mxu1  ;;  %v2858_v48 = vpop.f32.mrf.mxu0 }
  0xe2   : > { %v783_v14 = vpop.f32.mrf.mxu2  ;;  %v623_v57 = vadd.f32 %v622_v2, %v521_v17  ;;  %v2860_v24 = vpop.f32.mrf.mxu3 }
  0xe4   : > { %v791_v12 = vadd.f32 %v775_v27, %v623_v57 }
  0xe9   : > { %v625_v0 = vpop.f32.mrf.mxu1  ;;  %v1015_v5 = vpop.f32.mrf.mxu0 }
  0xea   : > { %v785_v39 = vpop.f32.mrf.mxu2  ;;  %v626_v58 = vadd.f32 %v625_v0, %v524_v30  ;;  %v2868_v55 = vpop.f32.mrf.mxu3 }
  0xec   : > { %v792_v54 = vadd.f32 %v778_v18, %v626_v58 }
  0xee   : > { %v904_v47 = vadd.f32 %v890_v44, %v792_v54 }
  0xf0   : > { %v2862_v49 = vadd.f32 %v1015_v5, %v904_v47 }
  0xf1   : > { %v627_v50 = vpop.f32.mrf.mxu1  ;;  %v2864_v52 = vpop.f32.mrf.mxu0 }
  0xf2   : > { %v1227_v35 = vpop.f32.mrf.mxu2  ;;  %v628_v41 = vadd.f32 %v627_v50, %v526_v22  ;;  %v1346_v25 = vpop.f32.mrf.mxu3 }
  0xf4   : > { %v2866_v4 = vadd.f32 %v780_v20, %v628_v41  ;;  %v903_v20 = vadd.f32 %v2854_v9, %v791_v12 }
  0xf9   : > { %v630_v61 = vpop.f32.mrf.mxu1  ;;  %v2870_v60 = vpop.f32.mrf.mxu0 }
  0xfa   : > { %v1229_v59 = vpop.f32.mrf.mxu2  ;;  %v631_v45 = vadd.f32 %v630_v61, %v529_v11  ;;  %v1348_v22 = vpop.f32.mrf.mxu3  ;;  %v1026_v11 = vadd.f32 %v1007_v37, %v901_v33 }
  0xfc   : > { %v2872_v6 = vadd.f32 %v783_v14, %v631_v45  ;;  %v1028_v14 = vadd.f32 %v2858_v48, %v903_v20 }
 0x101   : > { %v632_v30 = vpop.f32.mrf.mxu1  ;;  %v2874_v16 = vpop.f32.mrf.mxu0 }
 0x102   : > { %v1232_v40 = vpop.f32.mrf.mxu2  ;;  %v633_v19 = vadd.f32 %v632_v30, %v531_v7  ;;  %v1351_v63 = vpop.f32.mrf.mxu3 }
 0x104   : > { %v2876_v21 = vadd.f32 %v785_v39, %v633_v19 }
 0x109   : > { %v1121_v26 = vpop.f32.mrf.mxu1  ;;  %v1456_v29 = vpop.f32.mrf.mxu0 }
 0x10a   : > { %v1141_v51 = vadd.f32 %v1121_v26, %v1025_v15  ;;  %v1234_v31 = vpop.f32.mrf.mxu2  ;;  %v1353_v23 = vpop.f32.mrf.mxu3 }
 0x10c   : > { %v1247_v42 = vadd.f32 %v1227_v35, %v1141_v51 }
 0x10e   : > { %v1366_v17 = vadd.f32 %v1346_v25, %v1247_v42  ;;  %v905_v25 = vadd.f32 %v2856_v53, %v2866_v4 }
 0x110   : > { %v1476_v56 = vadd.f32 %v1456_v29, %v1366_v17 }
 0x111   : > { %v1123_v3 = vpop.f32.mrf.mxu1  ;;  %v1458_v27 = vpop.f32.mrf.mxu0 }
 0x112   : > { %v1142_v32 = vadd.f32 %v1123_v3, %v1026_v11  ;;  %v1237_v1 = vpop.f32.mrf.mxu2  ;;  %v1514_v15 = vmul.f32 %v1476_v56, %v1476_v56  ;;  %v1356_v35 = vpop.f32.mrf.mxu3 }
 0x114   : > { %v1248_v7 = vadd.f32 %v1229_v59, %v1142_v32 }
 0x116   : > { %v1367_v34 = vadd.f32 %v1348_v22, %v1248_v7  ;;  %v1030_v22 = vadd.f32 %v2864_v52, %v905_v25 }
 0x118   : > { %v1477_v18 = vadd.f32 %v1458_v27, %v1367_v34 }
 0x119   : > { %v1126_v13 = vpop.f32.mrf.mxu1  ;;  %v1461_v36 = vpop.f32.mrf.mxu0 }
 0x11a   : > { %v2222_v37 = vpack.c.bf16 %v1477_v18, %v1476_v56  ;;  %v1500_v38 = vadd.f32 %v1477_v18, %v1476_v56  ;;  %v1515_v43 = vmul.f32 %v1477_v18, %v1477_v18  ;;  %v1143_v44 = vadd.f32 %v1126_v13, %v1027_v10  ;;  %v1239_v8 = vpop.f32.mrf.mxu2  ;;  %v1358_v29 = vpop.f32.mrf.mxu3 }
 0x11b   : > { %v907_v18 = vadd.f32 %v2868_v55, %v2876_v21 }
 0x11c   : > { %2223 = vst [vmem:[%s2883_s29] sm:$0xff] %v2222_v37   ;;  %v1522_v46 = vadd.f32 %v1515_v43, %v1514_v15  ;;  %v1249_v28 = vadd.f32 %v1232_v40, %v1143_v44 }
 0x11e   : > { %v1368_v62 = vadd.f32 %v1351_v63, %v1249_v28 }
 0x120   : > { %v1478_v2 = vadd.f32 %v1461_v36, %v1368_v62  ;;  %v1032_v36 = vadd.f32 %v2874_v16, %v907_v18 }
 0x121   : > { %v1128_v57 = vpop.f32.mrf.mxu1  ;;  %v1463_v39 = vpop.f32.mrf.mxu0 }
 0x122   : > { %v1501_v0 = vadd.f32 %v1500_v38, %v1478_v2  ;;  %v1516_v5 = vmul.f32 %v1478_v2, %v1478_v2  ;;  %v1144_v58 = vadd.f32 %v1128_v57, %v1028_v14  ;;  %v1242_v12 = vpop.f32.mrf.mxu2  ;;  %v1361_v34 = vpop.f32.mrf.mxu3 }
 0x124   : > { %v1523_v54 = vadd.f32 %v1522_v46, %v1516_v5  ;;  %v1250_v47 = vadd.f32 %v1234_v31, %v1144_v58 }
 0x126   : > { %v1369_v10 = vadd.f32 %v1353_v23, %v1250_v47 }
 0x128   : > { %v1479_v9 = vadd.f32 %v1463_v39, %v1369_v10 }
 0x129   : > { %v1131_v50 = vpop.f32.mrf.mxu1  ;;  %v1466_v48 = vpop.f32.mrf.mxu0 }
 0x12a   : > { %v2227_v41 = vpack.c.bf16 %v1479_v9, %v1478_v2  ;;  %v1502_v59 = vadd.f32 %v1501_v0, %v1479_v9  ;;  %v1517_v61 = vmul.f32 %v1479_v9, %v1479_v9  ;;  %v1145_v45 = vadd.f32 %v1131_v50, %v2862_v49  ;;  %v1244_v11 = vpop.f32.mrf.mxu2  ;;  %v1363_v28 = vpop.f32.mrf.mxu3 }
 0x12b   : > { %v906_v49 = vadd.f32 %v2860_v24, %v2872_v6 }
 0x12c   : > { %2239 = vst [vmem:[%s2883_s29 + $0x8] sm:$0xff] %v2227_v41   ;;  %v1524_v40 = vadd.f32 %v1523_v54, %v1517_v61  ;;  %v1251_v30 = vadd.f32 %v1237_v1, %v1145_v45 }
 0x12d   : > { %v1031_v27 = vadd.f32 %v2870_v60, %v906_v49 }
 0x12e   : > { %v1370_v19 = vadd.f32 %v1356_v35, %v1251_v30 }
 0x130   : > { %v1480_v26 = vadd.f32 %v1466_v48, %v1370_v19 }
 0x131   : > { %v1133_v51 = vpop.f32.mrf.mxu1  ;;  %v1468_v53 = vpop.f32.mrf.mxu0 }
 0x132   : > { %v1503_v31 = vadd.f32 %v1502_v59, %v1480_v26  ;;  %v1518_v33 = vmul.f32 %v1480_v26, %v1480_v26  ;;  %v1146_v42 = vadd.f32 %v1133_v51, %v1030_v22  ;;  %v1471_v24 = vpop.f32.mrf.mxu2 }
 0x134   : > { %v1525_v17 = vadd.f32 %v1524_v40, %v1518_v33  ;;  %v1252_v3 = vadd.f32 %v1239_v8, %v1146_v42 }
 0x136   : > { %v1371_v4 = vadd.f32 %v1358_v29, %v1252_v3 }
 0x138   : > { %v1481_v32 = vadd.f32 %v1468_v53, %v1371_v4 }
 0x139   : > { %v1136_v63 = vpop.f32.mrf.mxu1 }
 0x13a   : > { %v2232_v52 = vpack.c.bf16 %v1481_v32, %v1480_v26  ;;  %v1504_v7 = vadd.f32 %v1503_v31, %v1481_v32  ;;  %v1519_v56 = vmul.f32 %v1481_v32, %v1481_v32  ;;  %v1147_v1 = vadd.f32 %v1136_v63, %v1031_v27  ;;  %v1473_v62 = vpop.f32.mrf.mxu2 }
 0x13c   : > { %2240 = vst [vmem:[%s2883_s29 + $0x10] sm:$0xff] %v2232_v52   ;;  %v1526_v15 = vadd.f32 %v1525_v17, %v1519_v56  ;;  %v1253_v13 = vadd.f32 %v1242_v12, %v1147_v1 }
 0x13e   : > { %v1372_v6 = vadd.f32 %v1361_v34, %v1253_v13 }
 0x140   : > { %v1482_v37 = vadd.f32 %v1471_v24, %v1372_v6 }
 0x141   : > { %v1138_v60 = vpop.f32.mrf.mxu1 }
 0x142   : > { %v1505_v38 = vadd.f32 %v1504_v7, %v1482_v37  ;;  %v1520_v43 = vmul.f32 %v1482_v37, %v1482_v37  ;;  %v1148_v44 = vadd.f32 %v1138_v60, %v1032_v36 }
 0x144   : > { %v1527_v20 = vadd.f32 %v1526_v15, %v1520_v43  ;;  %v1254_v46 = vadd.f32 %v1244_v11, %v1148_v44 }
 0x146   : > { %v1373_v23 = vadd.f32 %v1363_v28, %v1254_v46 }
 0x148   : > { %v1483_v55 = vadd.f32 %v1473_v62, %v1373_v23 }
 0x14a   : > { %v2237_v21 = vpack.c.bf16 %v1483_v55, %v1482_v37  ;;  %v1506_v8 = vadd.f32 %v1505_v38, %v1483_v55  ;;  %v1521_v14 = vmul.f32 %v1483_v55, %v1483_v55 }
 0x14c   : > { %2241 = vst [vmem:[%s2883_s29 + $0x18] sm:$0xff] %v2237_v21   ;;  %v1507_v2 = vrot.slane %v1506_v8, 4  ;;  %v1528_v57 = vadd.f32 %v1527_v20, %v1521_v14 }
 0x14e   : > { %v1508_v39 = vadd.f32 %v1507_v2, %v1506_v8  ;;  %v1529_v16 = vrot.slane %v1528_v57, 4 }
 0x150   : > { %v1509_v0 = vrot.slane %v1508_v39, 2  ;;  %v1530_v5 = vadd.f32 %v1529_v16, %v1528_v57 }
 0x152   : > { %v1510_v58 = vadd.f32 %v1509_v0, %v1508_v39  ;;  %v1531_v54 = vrot.slane %v1530_v5, 2 }
 0x154   : > { %v1511_v47 = vrot.slane %v1510_v58, 1  ;;  %v1532_v10 = vadd.f32 %v1531_v54, %v1530_v5 }
 0x156   : > { %v1512_v35 = vadd.f32 %v1511_v47, %v1510_v58  ;;  %v1533_v9 = vrot.slane %v1532_v10, 1 }
 0x158   : > { %1513 = vst [vmem:[%s265_s7] sm:$0xff] %v1512_v35  ;;  %v1534_v12 = vadd.f32 %v1533_v9, %v1532_v10 }
 0x15a   : > { %1535 = vst [vmem:[%s272_s10] sm:$0xff] %v1534_v12 }
 0x15b PF: > { %s15_s17 = sadd.s32 1, %s2305_s17   ;;  %s2926_s15 = smov %s2301_s16 }
 0x15c   : > { %p12_p6 = scmp.ge.s32.totalorder %s15_s17, 4   ;;  %s2927_s16 = smov %s2929_s18 }
 0x15e   :  { %14 = sbr.rel (!%p12_p6) target bundleno = 2 (0x2), region = 93 }

</bundles_post_ra>
